<compile_context>
chip_gen: v7x
topology: tpu7x:2x2x1
jax: 0.10.0
libtpu: 0.0.40
codegen_flags: <defaults>
</compile_context>

<pallas_src>
import jax
import jax.numpy as jnp
from jax.experimental import pallas as pl
from jax.experimental.pallas import tpu as pltpu

BN_EPS = 1e-5
A_PAD = 128                 # lane-dense logits width; padded cols get -1e30 bias
NEG_BIG = -1e30             # f32 only; do not move logits/softmax to bf16
HEAD_ROWS = 8               # one (8,128) tile: rows 0-2 wf/hw, 3 bf, 4 b1, 5 b2
PAR_ROWS = HEAD_ROWS + 128 + 128   # packed slab rows: head + fc1 + fc2


# ----------------------------------------------------------------------------
# Kernel (shared by the gridless and batch-tiled paths)
# ----------------------------------------------------------------------------
def _actor_kernel(x_ref,      # (TB, 3, hw) bf16   outsider piece, channel planes
                  par_ref,    # (264, 128)  f32    packed parameter slab
                  out_ref):   # (TB, A_PAD) f32    softmax probabilities (padded)
    f32 = jnp.float32

    # Upcast immediately after load (v5e has no bf16 VALU); accumulate pool in f32.
    x = x_ref[...].astype(f32)                       # (TB, 3, hw)
    pooled = jnp.sum(x, axis=-1)                     # (TB, 3) single lane reduce

    head = par_ref[0:HEAD_ROWS, :]                   # one aligned (8,128) tile
    wf0, wf1, wf2 = head[0:1, :], head[1:2, :], head[2:3, :]   # wf rows already /(H*W)
    bf, b1, b2 = head[3:4, :], head[4:5, :], head[5:6, :]

    # K=3 contraction as three VPU broadcast-FMAs (avoids a ~97%-padded MXU pass).
    feat = (bf
            + pooled[:, 0:1] * wf0
            + pooled[:, 1:2] * wf1
            + pooled[:, 2:3] * wf2)                  # (TB,128)

    # Actor head: fc1 restricted to the outsider half (image half folded into b1).
    w1 = par_ref[HEAD_ROWS:HEAD_ROWS + 128, :]       # (128,128)
    hid = jnp.dot(feat, w1, preferred_element_type=f32) + b1
    hid = jnp.maximum(hid, 0.0)                      # ReLU

    w2 = par_ref[HEAD_ROWS + 128:HEAD_ROWS + 256, :] # (128, A_PAD), zero-padded cols
    logits = jnp.dot(hid, w2, preferred_element_type=f32) + b2

    # Softmax over actions; padded columns contribute exp(-1e30) == 0.
    m = jnp.max(logits, axis=1, keepdims=True)
    e = jnp.exp(logits - m)
    # Exact divide (not approx reciprocal): downstream action sampling / log-prob
    # ratios need rows that sum to 1 to f32 precision.
    out_ref[...] = e / jnp.sum(e, axis=1, keepdims=True)


# ----------------------------------------------------------------------------
# Parameters (module-shaped) and offline folding into one packed slab
# ----------------------------------------------------------------------------
def init_params(key, action_num):
    ks = jax.random.split(key, 8)
    scale = 0.05

    def lin(k, fin, fout):
        kw, kb = jax.random.split(k)
        return (jax.random.normal(kw, (fin, fout), jnp.float32) * scale,
                jax.random.normal(kb, (1, fout), jnp.float32) * scale)

    # TODO(synk): the EfficientNet-B0 MBConv feature stack has no clean Pallas
    # translation; stand-in backbone = global average pool + 3->1280 linear stem,
    # followed by the (real) replaced classifier Linear(1280, 128).
    stem_w, stem_b = lin(ks[0], 3, 1280)
    cls_w, cls_b = lin(ks[1], 1280, 128)
    fen_fc1_w, fen_fc1_b = lin(ks[2], 128 * 12, 256)
    fen_fc2_w, fen_fc2_b = lin(ks[3], 256, 256)
    fc1_w, fc1_b = lin(ks[4], 384, 128)
    fc2_w, fc2_b = lin(ks[5], 128, action_num)
    bn_gamma = jnp.ones((1, 256), jnp.float32)
    bn_beta = jnp.zeros((1, 256), jnp.float32)
    bn_mean = jax.random.normal(ks[6], (1, 256), jnp.float32) * scale
    bn_var = jnp.abs(jax.random.normal(ks[7], (1, 256), jnp.float32)) + 1.0
    return dict(stem_w=stem_w, stem_b=stem_b, cls_w=cls_w, cls_b=cls_b,
                fen_fc1_w=fen_fc1_w, fen_fc1_b=fen_fc1_b,
                bn_gamma=bn_gamma, bn_beta=bn_beta, bn_mean=bn_mean, bn_var=bn_var,
                fen_fc2_w=fen_fc2_w, fen_fc2_b=fen_fc2_b,
                fc1_w=fc1_w, fc1_b=fc1_b, fc2_w=fc2_w, fc2_b=fc2_b)


def fold_actor_params(p, hw):
    """One-time offline folding (plain XLA). Output: one (264,128) f32 slab."""
    f32 = jnp.float32

    # Fuse proxy stem and replaced classifier; fold 1/(H*W) of the avg-pool in too.
    wf = (jnp.dot(p["stem_w"], p["cls_w"]) / float(hw)).astype(f32)      # (3,128)
    bf = (jnp.dot(p["stem_b"], p["cls_w"]) + p["cls_b"]).astype(f32)     # (1,128)

    # Image branch: feature_tensor == 0 exactly -> head run on zeros is a constant.
    h = p["fen_fc1_b"]                                                   # fc1(0) = bias
    inv_std = jax.lax.rsqrt(p["bn_var"] + BN_EPS)
    h = (h - p["bn_mean"]) * inv_std * p["bn_gamma"] + p["bn_beta"]
    h = jnp.maximum(h, 0.0)                                              # ReLU
    image_feat = jnp.dot(h, p["fen_fc2_w"]) + p["fen_fc2_b"]             # (1,256)

    # Fold the constant image_feat through the first 256 rows of actor fc1.
    b1 = (jnp.dot(image_feat, p["fc1_w"][:256]) + p["fc1_b"]).astype(f32)  # (1,128)
    w1 = p["fc1_w"][256:].astype(f32)                                      # (128,128)

    # Pad fc2 to a lane-dense 128-wide logits slab (softmax-safe -1e30 bias).
    A = p["fc2_b"].shape[-1]
    w2 = jnp.zeros((128, A_PAD), f32).at[:, :A].set(p["fc2_w"].astype(f32))
    b2 = jnp.full((1, A_PAD), NEG_BIG, f32).at[:, :A].set(p["fc2_b"].astype(f32))

    # Pack everything into one slab -> a single parameter DMA into the kernel.
    head = jnp.zeros((HEAD_ROWS, A_PAD), f32)
    head = head.at[0:3, :].set(wf)
    head = head.at[3:4, :].set(bf)
    head = head.at[4:5, :].set(b1)
    head = head.at[5:6, :].set(b2)
    slab = jnp.concatenate([head, w1, w2], axis=0)                       # (264,128)
    return dict(slab=slab, action_num=A, hw=hw)


# ----------------------------------------------------------------------------
# Forward wrapper
# ----------------------------------------------------------------------------
def actor_forward(folded, image, outsider_piece, *, batch_tile=256):
    # `image` is numerically dead: fen_model's feature_tensor is exactly zero
    # (ef(frag) - ef(frag)); its constant head output is already folded into b1.
    del image
    B, C, H, W = outsider_piece.shape
    hw = H * W
    assert C == 3 and hw == folded["hw"]
    assert hw % 128 == 0, "channel planes must be lane-aligned (pad H*W to 128)"
    A = folded["action_num"]
    slab = folded["slab"]

    x = outsider_piece.reshape(B, C, hw)     # free: merges trailing contiguous dims
    if x.dtype != jnp.bfloat16:              # halve the only meaningful HBM stream
        x = x.astype(jnp.bfloat16)           # (callers should provide bf16 directly)

    if B <= batch_tile:
        # Gridless: everything fits comfortably in VMEM at small batch.
        vmem = pl.BlockSpec(memory_space=pltpu.MemorySpace.VMEM)
        out_pad = pl.pallas_call(
            _actor_kernel,
            out_shape=jax.ShapeDtypeStruct((B, A_PAD), jnp.float32),
            in_specs=[vmem, vmem],
            out_specs=vmem,
        )(x, slab)
    else:
        # Batch-tiled, megacore-parallel path for RL-sized batches. batch_tile<=256
        # keeps 2x double-buffered x blocks well under v7x's 64 MiB VMEM; on
        # v6e/v5e a larger tile (512-1024) further amortizes per-step overhead.
        tb = batch_tile
        nb = pl.cdiv(B, tb)
        bp = nb * tb
        if bp != B:   # zero rows pool to bf -> valid finite softmax; dropped below
            x = jnp.concatenate([x, jnp.zeros((bp - B, C, hw), x.dtype)], axis=0)
        out_pad = pl.pallas_call(
            _actor_kernel,
            out_shape=jax.ShapeDtypeStruct((bp, A_PAD), jnp.float32),
            grid_spec=pltpu.PrefetchScalarGridSpec(
                num_scalar_prefetch=0,
                grid=(nb,),
                in_specs=[pl.BlockSpec((tb, C, hw), lambda i: (i, 0, 0)),
                          # constant index_map -> weight slab stays VMEM-resident
                          pl.BlockSpec((PAR_ROWS, A_PAD), lambda i: (0, 0))],
                out_specs=pl.BlockSpec((tb, A_PAD), lambda i: (i, 0))),
            compiler_params=pltpu.CompilerParams(
                dimension_semantics=("parallel",),
                vmem_limit_bytes=32 * 1024 * 1024),
        )(x, slab)
        out_pad = out_pad[:B]

    # Lane-dense padded slab is the kernel output; this slice fuses into the
    # caller's jit (callers that can consume the padded slab should).
    return out_pad[:, :A]


# ----------------------------------------------------------------------------
# Pure-JAX reference mirroring the eval-mode module math (with the stand-in backbone)
# ----------------------------------------------------------------------------
def reference_forward(p, outsider_piece):
    f32 = jnp.float32
    B, C, H, W = outsider_piece.shape
    pooled = jnp.mean(outsider_piece.astype(f32).reshape(B, C, H * W), axis=-1)
    o = jnp.dot(pooled, p["stem_w"]) + p["stem_b"]
    o = jnp.dot(o, p["cls_w"]) + p["cls_b"]                            # (B,128)
    z = jnp.zeros((B, 128 * 12), f32)                                  # ef(f)-ef(f)==0
    h = jnp.dot(z, p["fen_fc1_w"]) + p["fen_fc1_b"]
    h = (h - p["bn_mean"]) * jax.lax.rsqrt(p["bn_var"] + BN_EPS) * p["bn_gamma"] + p["bn_beta"]
    h = jnp.maximum(h, 0.0)
    img = jnp.dot(h, p["fen_fc2_w"]) + p["fen_fc2_b"]                  # (B,256)
    feat = jnp.concatenate([img, o], axis=1)                           # (B,384)
    hid = jnp.maximum(jnp.dot(feat, p["fc1_w"]) + p["fc1_b"], 0.0)
    logits = jnp.dot(hid, p["fc2_w"]) + p["fc2_b"]
    return jax.nn.softmax(logits, axis=1)


if __name__ == "__main__":
    key = jax.random.PRNGKey(0)
    kp, ki, ko, kb = jax.random.split(key, 4)
    action_num = 8
    H = W = 64

    params = init_params(kp, action_num)
    folded = fold_actor_params(params, hw=H * W)

    image = jax.random.normal(ki, (2, 3, 288, 288), jnp.float32)        # 3x3 grid of 96x96 crops
    outsider = jax.random.normal(ko, (2, 3, H, W), jnp.float32).astype(jnp.bfloat16)

    # Small-batch (gridless) path.
    fwd = jax.jit(lambda img, piece: actor_forward(folded, img, piece))
    out = jax.block_until_ready(fwd(image, outsider))
    ref = reference_forward(params, outsider)
    assert out.shape == (2, action_num), out.shape
    assert bool(jnp.all(jnp.isfinite(out)))
    assert bool(jnp.all(out >= 0.0))
    assert bool(jnp.allclose(jnp.sum(out, axis=1), 1.0, atol=1e-4))
    assert bool(jnp.allclose(out, ref, atol=2e-3)), float(jnp.max(jnp.abs(out - ref)))

    # Batch-tiled, megacore-parallel path (exercised with batch_tile=128).
    big = jax.random.normal(kb, (256, 3, H, W), jnp.float32).astype(jnp.bfloat16)
    fwd_big = jax.jit(lambda piece: actor_forward(folded, None, piece, batch_tile=128))
    out_big = jax.block_until_ready(fwd_big(big))
    ref_big = reference_forward(params, big)
    assert out_big.shape == (256, action_num), out_big.shape
    assert bool(jnp.all(jnp.isfinite(out_big)))
    assert bool(jnp.all(out_big >= 0.0))
    assert bool(jnp.allclose(jnp.sum(out_big, axis=1), 1.0, atol=1e-4))
    assert bool(jnp.allclose(out_big, ref_big, atol=2e-3))

    print("KERNEL_OK")
</pallas_src>

<mosaic_0001>
module attributes {stable_mosaic.version = 11 : i64} {
  func.func @_actor_kernel(%arg0: memref<2x3x4096xbf16, #tpu.memory_space<vmem>>, %arg1: memref<264x128xf32, #tpu.memory_space<vmem>>, %arg2: memref<2x128xf32, #tpu.memory_space<vmem>>) attributes {dimension_semantics = [], scalar_prefetch = 0 : i64, scratch_operands = 0 : i64, tpu.core_type = #tpu.core_type<tc>} {
    %c0 = arith.constant 0 : index
    %c0_0 = arith.constant 0 : index
    %c0_1 = arith.constant 0 : index
    %0 = vector.load %arg0[%c0, %c0_0, %c0_1] : memref<2x3x4096xbf16, #tpu.memory_space<vmem>>, vector<2x3x4096xbf16>
    %1 = arith.extf %0 : vector<2x3x4096xbf16> to vector<2x3x4096xf32>
    %cst = arith.constant dense<0.000000e+00> : vector<2x3xf32>
    %2 = vector.multi_reduction <add>, %1, %cst [2] : vector<2x3x4096xf32> to vector<2x3xf32>
    %c0_2 = arith.constant 0 : index
    %c0_3 = arith.constant 0 : index
    %3 = vector.load %arg1[%c0_2, %c0_3] : memref<264x128xf32, #tpu.memory_space<vmem>>, vector<8x128xf32>
    %4 = vector.extract_strided_slice %3 {offsets = [0, 0], sizes = [1, 128], strides = [1, 1]} : vector<8x128xf32> to vector<1x128xf32>
    %5 = vector.extract_strided_slice %3 {offsets = [1, 0], sizes = [1, 128], strides = [1, 1]} : vector<8x128xf32> to vector<1x128xf32>
    %6 = vector.extract_strided_slice %3 {offsets = [2, 0], sizes = [1, 128], strides = [1, 1]} : vector<8x128xf32> to vector<1x128xf32>
    %7 = vector.extract_strided_slice %3 {offsets = [3, 0], sizes = [1, 128], strides = [1, 1]} : vector<8x128xf32> to vector<1x128xf32>
    %8 = vector.extract_strided_slice %3 {offsets = [4, 0], sizes = [1, 128], strides = [1, 1]} : vector<8x128xf32> to vector<1x128xf32>
    %9 = vector.extract_strided_slice %3 {offsets = [5, 0], sizes = [1, 128], strides = [1, 1]} : vector<8x128xf32> to vector<1x128xf32>
    %10 = vector.extract_strided_slice %2 {offsets = [0, 0], sizes = [2, 1], strides = [1, 1]} : vector<2x3xf32> to vector<2x1xf32>
    %11 = vector.broadcast %10 : vector<2x1xf32> to vector<2x128xf32>
    %12 = vector.broadcast %4 : vector<1x128xf32> to vector<2x128xf32>
    %13 = arith.mulf %11, %12 : vector<2x128xf32>
    %14 = vector.broadcast %7 : vector<1x128xf32> to vector<2x128xf32>
    %15 = arith.addf %14, %13 : vector<2x128xf32>
    %16 = vector.extract_strided_slice %2 {offsets = [0, 1], sizes = [2, 1], strides = [1, 1]} : vector<2x3xf32> to vector<2x1xf32>
    %17 = vector.broadcast %16 : vector<2x1xf32> to vector<2x128xf32>
    %18 = vector.broadcast %5 : vector<1x128xf32> to vector<2x128xf32>
    %19 = arith.mulf %17, %18 : vector<2x128xf32>
    %20 = arith.addf %15, %19 : vector<2x128xf32>
    %21 = vector.extract_strided_slice %2 {offsets = [0, 2], sizes = [2, 1], strides = [1, 1]} : vector<2x3xf32> to vector<2x1xf32>
    %22 = vector.broadcast %21 : vector<2x1xf32> to vector<2x128xf32>
    %23 = vector.broadcast %6 : vector<1x128xf32> to vector<2x128xf32>
    %24 = arith.mulf %22, %23 : vector<2x128xf32>
    %25 = arith.addf %20, %24 : vector<2x128xf32>
    %c8 = arith.constant 8 : index
    %c0_4 = arith.constant 0 : index
    %26 = vector.load %arg1[%c8, %c0_4] : memref<264x128xf32, #tpu.memory_space<vmem>>, vector<128x128xf32>
    %cst_5 = arith.constant dense<0.000000e+00> : vector<2x128xf32>
    %27 = tpu.matmul %25, %26, %cst_5 {dimension_numbers = #tpu.dot_dimension_numbers<[1], [0], [0], [1], [0, 0, 1, 1], [], []>} : vector<2x128xf32>, vector<128x128xf32>, vector<2x128xf32> -> vector<2x128xf32>
    %28 = vector.broadcast %8 : vector<1x128xf32> to vector<2x128xf32>
    %29 = arith.addf %27, %28 : vector<2x128xf32>
    %cst_6 = arith.constant 0.000000e+00 : f32
    %30 = vector.broadcast %cst_6 : f32 to vector<2x128xf32>
    %31 = arith.maximumf %29, %30 : vector<2x128xf32>
    %c136 = arith.constant 136 : index
    %c0_7 = arith.constant 0 : index
    %32 = vector.load %arg1[%c136, %c0_7] : memref<264x128xf32, #tpu.memory_space<vmem>>, vector<128x128xf32>
    %cst_8 = arith.constant dense<0.000000e+00> : vector<2x128xf32>
    %33 = tpu.matmul %31, %32, %cst_8 {dimension_numbers = #tpu.dot_dimension_numbers<[1], [0], [0], [1], [0, 0, 1, 1], [], []>} : vector<2x128xf32>, vector<128x128xf32>, vector<2x128xf32> -> vector<2x128xf32>
    %34 = vector.broadcast %9 : vector<1x128xf32> to vector<2x128xf32>
    %35 = arith.addf %33, %34 : vector<2x128xf32>
    %cst_9 = arith.constant dense<0xFF800000> : vector<2xf32>
    %36 = vector.multi_reduction <maximumf>, %35, %cst_9 [1] : vector<2x128xf32> to vector<2xf32>
    %37 = vector.shape_cast %36 : vector<2xf32> to vector<2x1xf32>
    %38 = vector.broadcast %37 : vector<2x1xf32> to vector<2x128xf32>
    %39 = arith.subf %35, %38 : vector<2x128xf32>
    %40 = math.exp %39 : vector<2x128xf32>
    %cst_10 = arith.constant dense<0.000000e+00> : vector<2xf32>
    %41 = vector.multi_reduction <add>, %40, %cst_10 [1] : vector<2x128xf32> to vector<2xf32>
    %42 = vector.shape_cast %41 : vector<2xf32> to vector<2x1xf32>
    %43 = vector.broadcast %42 : vector<2x1xf32> to vector<2x128xf32>
    %44 = arith.divf %40, %43 : vector<2x128xf32>
    %c0_11 = arith.constant 0 : index
    %c0_12 = arith.constant 0 : index
    %45 = vector.load %arg2[%c0_11, %c0_12] : memref<2x128xf32, #tpu.memory_space<vmem>>, vector<2x128xf32>
    tpu.vector_store %arg2[%c0_11, %c0_12], %44 {strides = array<i32>} : memref<2x128xf32, #tpu.memory_space<vmem>>, vector<2x128xf32>,
    return
  }
}

</mosaic_0001>

<bundles_post_ra>
// kernel: _lambda_.1
= control target key start
LH: loop header
LB: loop body
LE: loop exit
PB: predicated region body
PF: predicated region fallthrough
CT: control target
= control target key end

     0   :  { %v288_v0 = vlaneseq  ;;  %s2873_s0 = inlined_call_operand.vmem [shape: bf16[2,3,4096], index: 0, kind: input, shape index: {}]   ;;  %s2874_s1 = inlined_call_operand.vmem [shape: f32[264,128], index: 1, kind: input, shape index: {}]   ;;  %s2875_s2 = inlined_call_operand.hbm [shape: f32[2,128], index: 2, kind: output, shape index: {}]  }
   0x1   :  { %v12_v1 = vld [vmem:[%s2873_s0] sm:$0xff] }
   0x2   :  { %v1984_v2 = vshrl.u32 %v288_v0, 7  ;;  %v287_v3 = vld [vmem:[%s2874_s1] sm:$0xff]  ;;  %v28_v4 = vunpack.c.l.bf16 %v12_v1  ;;  %v29_v7 = vunpack.c.h.bf16 %v12_v1 }
   0x4   :  { %v1990_v5 = vsub.s32 0, %v1984_v2  ;;  %v1993_v6 = vsub.s32 1, %v1984_v2 }
   0x5   :  { %7 = vsyncpa [#allocation3], 0  ;;  %v13_v9 = vld [vmem:[%s2873_s0 + $0x8] sm:$0xff]  ;;  %vm156_vm0 = vcmask 1042432   ;;  %v92_v10 = vcombine.high %v28_v4, %v28_v4  ;;  %v2007_v12 = vsub.s32 2, %v1984_v2  ;;  %v93_v14 = vcombine.high %v29_v7, %v29_v7  ;;  %v14_v23 = vld [vmem:[%s2873_s0 + $0x10] sm:$0xff] }
   0x6   :  { %v1996_v8 = vrot.slane %v287_v3, %v1990_v5  ;;  %v2004_v11 = vrot.slane %v287_v3, %v1993_v6  ;;  %v30_v13 = vunpack.c.l.bf16 %v13_v9  ;;  %v157_v15 = vsel %vm156_vm0, %v28_v4, 0.0  ;;  %v20_v31 = vld [vmem:[%s2873_s0 + $0x40] sm:$0xff]  ;;  %v15_v38 = vld [vmem:[%s2873_s0 + $0x18] sm:$0xff]  ;;  %v21_v43 = vld [vmem:[%s2873_s0 + $0x48] sm:$0xff] }
   0x7   :  { %v158_v16 = vsel %vm156_vm0, %v92_v10, 0.0  ;;  %v160_v17 = vsel %vm156_vm0, %v29_v7, 0.0  ;;  %v2015_v18 = vrot.slane %v287_v3, %v2007_v12  ;;  %v31_v20 = vunpack.c.h.bf16 %v13_v9  ;;  %v16_v59 = vld [vmem:[%s2873_s0 + $0x20] sm:$0xff]  ;;  %v22_v7 = vld [vmem:[%s2873_s0 + $0x50] sm:$0xff] }
   0x8   :  { %310 = vbcast.lane.b32.xlu0 %v1996_v8, 272  ;;  %302 = vbcast.lane.b32.xlu1 %v1996_v8, 256  ;;  %v159_v19 = vadd.f32 %v158_v16, %v157_v15  ;;  %v94_v21 = vcombine.high %v30_v13, %v30_v13  ;;  %v162_v22 = vsel %vm156_vm0, %v93_v14, 0.0  ;;  %v164_v25 = vsel %vm156_vm0, %v30_v13, 0.0 }
   0x9   :  { %v32_v27 = vunpack.c.l.bf16 %v14_v23  ;;  %v95_v28 = vcombine.high %v31_v20, %v31_v20  ;;  %v168_v32 = vsel %vm156_vm0, %v31_v20, 0.0  ;;  %v33_v34 = vunpack.c.h.bf16 %v14_v23 }
   0xa   :  { %v161_v24 = vadd.f32 %v160_v17, %v159_v19  ;;  %v166_v29 = vsel %vm156_vm0, %v94_v21, 0.0  ;;  %v44_v37 = vunpack.c.l.bf16 %v20_v31  ;;  %v45_v41 = vunpack.c.h.bf16 %v20_v31 }
   0xb   :  { %v96_v35 = vcombine.high %v32_v27, %v32_v27  ;;  %v170_v36 = vsel %vm156_vm0, %v95_v28, 0.0  ;;  %v172_v40 = vsel %vm156_vm0, %v32_v27, 0.0  ;;  %v34_v44 = vunpack.c.l.bf16 %v15_v38 }
   0xc   :  { %764 = vbcast.lane.b32.xlu0 %v2004_v11, 280  ;;  %306 = vbcast.lane.b32.xlu1 %v1996_v8, 264  ;;  %v163_v26 = vadd.f32 %v162_v22, %v161_v24  ;;  %v97_v45 = vcombine.high %v33_v34, %v33_v34  ;;  %v108_v47 = vcombine.high %v44_v37, %v44_v37  ;;  %v176_v49 = vsel %vm156_vm0, %v33_v34, 0.0 }
   0xd   :  { %v174_v46 = vsel %vm156_vm0, %v96_v35, 0.0  ;;  %v46_v50 = vunpack.c.l.bf16 %v21_v43  ;;  %v109_v51 = vcombine.high %v45_v41, %v45_v41  ;;  %v35_v52 = vunpack.c.h.bf16 %v15_v38 }
   0xe   :  { %v165_v30 = vadd.f32 %v164_v25, %v163_v26  ;;  %v222_v54 = vsel %vm156_vm0, %v44_v37, 0.0  ;;  %v98_v55 = vcombine.high %v34_v44, %v34_v44  ;;  %v178_v56 = vsel %vm156_vm0, %v97_v45, 0.0  ;;  %v23_v37 = vld [vmem:[%s2873_s0 + $0x58] sm:$0xff] }
   0xf   :  { %v223_v57 = vsel %vm156_vm0, %v108_v47, 0.0  ;;  %v225_v58 = vsel %vm156_vm0, %v45_v41, 0.0  ;;  %v180_v62 = vsel %vm156_vm0, %v34_v44, 0.0  ;;  %v47_v63 = vunpack.c.h.bf16 %v21_v43 }
  0x10   :  { %1169 = vbcast.lane.b32.xlu0 %v2015_v18, 264  ;;  %314 = vbcast.lane.b32.xlu1 %v1996_v8, 280  ;;  %v167_v33 = vadd.f32 %v166_v29, %v165_v30  ;;  %v224_v61 = vadd.f32 %v223_v57, %v222_v54  ;;  %v110_v1 = vcombine.high %v46_v50, %v46_v50  ;;  %v227_v3 = vsel %vm156_vm0, %v109_v51, 0.0  ;;  %v17_v29 = vld [vmem:[%s2873_s0 + $0x28] sm:$0xff] }
  0x11   :  { %v36_v10 = vunpack.c.l.bf16 %v16_v59  ;;  %v99_v13 = vcombine.high %v35_v52, %v35_v52  ;;  %v182_v14 = vsel %vm156_vm0, %v98_v55, 0.0  ;;  %v229_v15 = vsel %vm156_vm0, %v46_v50, 0.0  ;;  %v18_v55 = vld [vmem:[%s2873_s0 + $0x30] sm:$0xff] }
  0x12   :  { %v169_v39 = vadd.f32 %v168_v32, %v167_v33  ;;  %v226_v9 = vadd.f32 %v225_v58, %v224_v61  ;;  %v184_v19 = vsel %vm156_vm0, %v35_v52, 0.0  ;;  %v48_v20 = vunpack.c.l.bf16 %v22_v7 }
  0x13   :  { %v111_v21 = vcombine.high %v47_v63, %v47_v63  ;;  %v231_v22 = vsel %vm156_vm0, %v110_v1, 0.0  ;;  %v37_v25 = vunpack.c.h.bf16 %v16_v59  ;;  %v100_v26 = vcombine.high %v36_v10, %v36_v10 }
  0x14   :  { %768 = vbcast.lane.b32.xlu0 %v2004_v11, 288  ;;  %752 = vbcast.lane.b32.xlu1 %v2004_v11, 256  ;;  %v171_v42 = vadd.f32 %v170_v36, %v169_v39  ;;  %v228_v17 = vadd.f32 %v227_v3, %v226_v9  ;;  %v186_v27 = vsel %vm156_vm0, %v99_v13, 0.0  ;;  %v233_v28 = vsel %vm156_vm0, %v47_v63, 0.0  ;;  %v24_v63 = vld [vmem:[%s2873_s0 + $0x60] sm:$0xff] }
  0x15   :  { %v188_v32 = vsel %vm156_vm0, %v36_v10, 0.0  ;;  %v49_v33 = vunpack.c.h.bf16 %v22_v7  ;;  %v112_v34 = vcombine.high %v48_v20, %v48_v20  ;;  %v235_v35 = vsel %vm156_vm0, %v111_v21, 0.0 }
  0x16   :  { %v173_v48 = vadd.f32 %v172_v40, %v171_v42  ;;  %v230_v24 = vadd.f32 %v229_v15, %v228_v17  ;;  %v38_v39 = vunpack.c.l.bf16 %v17_v29  ;;  %v101_v40 = vcombine.high %v37_v25, %v37_v25 }
  0x17   :  { %v190_v41 = vsel %vm156_vm0, %v100_v26, 0.0  ;;  %v237_v42 = vsel %vm156_vm0, %v48_v20, 0.0  ;;  %v192_v45 = vsel %vm156_vm0, %v37_v25, 0.0  ;;  %v113_v47 = vcombine.high %v49_v33, %v49_v33  ;;  %v19_v25 = vld [vmem:[%s2873_s0 + $0x38] sm:$0xff] }
  0x18   :  { %330 = vbcast.lane.b32.xlu0 %v1996_v8, 312  ;;  %756 = vbcast.lane.b32.xlu1 %v2004_v11, 264  ;;  %v175_v53 = vadd.f32 %v174_v46, %v173_v48  ;;  %v232_v31 = vadd.f32 %v231_v22, %v230_v24  ;;  %v50_v46 = vunpack.c.l.bf16 %v23_v37  ;;  %v239_v48 = vsel %vm156_vm0, %v112_v34, 0.0 }
  0x19   :  { %v39_v51 = vunpack.c.h.bf16 %v17_v29  ;;  %v102_v52 = vcombine.high %v38_v39, %v38_v39  ;;  %v241_v54 = vsel %vm156_vm0, %v49_v33, 0.0  ;;  %v196_v58 = vsel %vm156_vm0, %v38_v39, 0.0  ;;  %v25_v33 = vld [vmem:[%s2873_s0 + $0x68] sm:$0xff] }
  0x1a   :  { %v177_v60 = vadd.f32 %v176_v49, %v175_v53  ;;  %v234_v38 = vadd.f32 %v233_v28, %v232_v31  ;;  %v194_v53 = vsel %vm156_vm0, %v101_v40, 0.0  ;;  %v51_v59 = vunpack.c.h.bf16 %v23_v37 }
  0x1b   :  { %v243_v61 = vsel %vm156_vm0, %v113_v47, 0.0  ;;  %v40_v3 = vunpack.c.l.bf16 %v18_v55  ;;  %v198_v7 = vsel %vm156_vm0, %v102_v52, 0.0  ;;  %v245_v9 = vsel %vm156_vm0, %v50_v46, 0.0 }
  0x1c   :  { %1177 = vbcast.lane.b32.xlu0 %v2015_v18, 280  ;;  %318 = vbcast.lane.b32.xlu1 %v1996_v8, 288  ;;  %v179_v4 = vadd.f32 %v178_v56, %v177_v60  ;;  %v236_v44 = vadd.f32 %v235_v35, %v234_v38  ;;  %v114_v60 = vcombine.high %v50_v46, %v50_v46  ;;  %v52_v15 = vunpack.c.l.bf16 %v24_v63 }
  0x1d   :  { %v41_v21 = vunpack.c.h.bf16 %v18_v55  ;;  %v104_v22 = vcombine.high %v40_v3, %v40_v3  ;;  %v249_v24 = vsel %vm156_vm0, %v51_v59, 0.0  ;;  %v204_v28 = vsel %vm156_vm0, %v40_v3, 0.0 }
  0x1e   :  { %v181_v16 = vadd.f32 %v180_v62, %v179_v4  ;;  %v238_v50 = vadd.f32 %v237_v42, %v236_v44  ;;  %v103_v4 = vcombine.high %v39_v51, %v39_v51  ;;  %v247_v17 = vsel %vm156_vm0, %v114_v60, 0.0 }
  0x1f   :  { %v53_v29 = vunpack.c.h.bf16 %v24_v63  ;;  %v42_v35 = vunpack.c.l.bf16 %v19_v25  ;;  %v206_v37 = vsel %vm156_vm0, %v104_v22, 0.0  ;;  %v253_v38 = vsel %vm156_vm0, %v52_v15, 0.0  ;;  %v27_v22 = vld [vmem:[%s2873_s0 + $0x78] sm:$0xff] }
  0x20   :  { %776 = vbcast.lane.b32.xlu0 %v2004_v11, 304  ;;  %760 = vbcast.lane.b32.xlu1 %v2004_v11, 272  ;;  %v183_v23 = vadd.f32 %v182_v14, %v181_v16  ;;  %v240_v57 = vadd.f32 %v239_v48, %v238_v50  ;;  %v200_v14 = vsel %vm156_vm0, %v39_v51, 0.0  ;;  %v115_v16 = vcombine.high %v51_v59, %v51_v59 }
  0x21   :  { %v54_v42 = vunpack.c.l.bf16 %v25_v33  ;;  %v106_v47 = vcombine.high %v42_v35, %v42_v35  ;;  %v212_v52 = vsel %vm156_vm0, %v42_v35, 0.0  ;;  %vm555_vm1 = vcmask 130112  }
  0x22   :  { %v185_v30 = vadd.f32 %v184_v19, %v183_v23  ;;  %v242_v1 = vadd.f32 %v241_v54, %v240_v57  ;;  %v202_v23 = vsel %vm156_vm0, %v103_v4, 0.0  ;;  %v251_v31 = vsel %vm156_vm0, %v115_v16, 0.0 }
  0x23   :  { %v118_v54 = vcombine.high %v54_v42, %v54_v42  ;;  %v214_v60 = vsel %vm156_vm0, %v106_v47, 0.0  ;;  %v1960_v47 = vmov 0   ;;  %vm562_vm2 = vcmask 195712  }
  0x24   :  { %338 = vbcast.lane.b32.xlu0 %v1996_v8, 328  ;;  %322 = vbcast.lane.b32.xlu1 %v1996_v8, 296  ;;  %v187_v36 = vadd.f32 %v186_v27, %v185_v30  ;;  %v244_v13 = vadd.f32 %v243_v61, %v242_v1  ;;  %v116_v30 = vcombine.high %v52_v15, %v52_v15  ;;  %v261_v61 = vsel %vm156_vm0, %v54_v42, 0.0 }
  0x25   :  { %v263_v4 = vsel %vm156_vm0, %v118_v54, 0.0  ;;  %1930 = vset.pattern.permute.xlu0 %v1960_v47  ;;  %1929 = vset.pattern.permute.xlu1 %v1960_v47  ;;  %vm569_vm3 = vcmask 261312   ;;  %vm576_vm4 = vcmask 326912   ;;  %vm583_vm5 = vcmask 392512  }
  0x26   :  { %v189_v43 = vadd.f32 %v188_v32, %v187_v36  ;;  %v246_v20 = vadd.f32 %v245_v9, %v244_v13  ;;  %v105_v36 = vcombine.high %v41_v21, %v41_v21  ;;  %v255_v44 = vsel %vm156_vm0, %v116_v30, 0.0 }
  0x27   :  { %vm590_vm6 = vcmask 458112   ;;  %vm597_vm7 = vcmask 523712   ;;  %vm604_vm8 = vcmask 589312   ;;  %vm1962_vm9 = vmmov 0  }
  0x28   :  { %1185 = vbcast.lane.b32.xlu0 %v2015_v18, 296  ;;  %1165 = vbcast.lane.b32.xlu1 %v2015_v18, 256  ;;  %v191_v49 = vadd.f32 %v190_v41, %v189_v43  ;;  %v248_v27 = vadd.f32 %v247_v17, %v246_v20  ;;  %v208_v41 = vsel %vm156_vm0, %v41_v21, 0.0  ;;  %v117_v43 = vcombine.high %v53_v29, %v53_v29 }
  0x29   :  { %v210_v48 = vsel %vm156_vm0, %v105_v36, 0.0  ;;  %vm611_vm10 = vcmask 654912   ;;  %vm618_vm11 = vcmask 720512   ;;  %vm625_vm12 = vcmask 786112  }
  0x2a   :  { %v193_v56 = vadd.f32 %v192_v45, %v191_v49  ;;  %v250_v34 = vadd.f32 %v249_v24, %v248_v27  ;;  %v257_v49 = vsel %vm156_vm0, %v53_v29, 0.0  ;;  %v259_v55 = vsel %vm156_vm0, %v117_v43, 0.0 }
  0x2b   :  { %v58_v27 = vunpack.c.l.bf16 %v27_v22  ;;  %vm632_vm13 = vcmask 851712   ;;  %vm639_vm14 = vcmask 917312   ;;  %vm646_vm15 = vcmask 982912  }
  0x2c   :  { %784 = vbcast.lane.b32.xlu0 %v2004_v11, 320  ;;  %326 = vbcast.lane.b32.xlu1 %v1996_v8, 304  ;;  %v195_v62 = vadd.f32 %v194_v53, %v193_v56  ;;  %v252_v40 = vadd.f32 %v251_v31, %v250_v34  ;;  %v55_v53 = vunpack.c.h.bf16 %v25_v33  ;;  %v43_v56 = vunpack.c.h.bf16 %v19_v25 }
  0x2d   :  { %v59_v33 = vunpack.c.h.bf16 %v27_v22  ;;  %v122_v34 = vcombine.high %v58_v27, %v58_v27 }
  0x2e   :  { %v197_v10 = vadd.f32 %v196_v58, %v195_v62  ;;  %v254_v46 = vadd.f32 %v253_v38, %v252_v40  ;;  %v26_v58 = vld [vmem:[%s2873_s0 + $0x70] sm:$0xff]  ;;  %v119_v3 = vcombine.high %v55_v53, %v55_v53 }
  0x2f   :  { %v56_v1 = vunpack.c.l.bf16 %v26_v58  ;;  %v57_v17 = vunpack.c.h.bf16 %v26_v58  ;;  %v279_v40 = vsel %vm156_vm0, %v122_v34, 0.0  ;;  %v281_v42 = vsel %vm156_vm0, %v59_v33, 0.0 }
  0x30   :  { %346 = vbcast.lane.b32.xlu0 %v1996_v8, 344  ;;  %1173 = vbcast.lane.b32.xlu1 %v2015_v18, 272  ;;  %v199_v19 = vadd.f32 %v198_v7, %v197_v10  ;;  %v256_v51 = vadd.f32 %v255_v44, %v254_v46  ;;  %v107_v7 = vcombine.high %v43_v56, %v43_v56  ;;  %v216_v10 = vsel %vm156_vm0, %v43_v56, 0.0 }
  0x31   :  { %v267_v20 = vsel %vm156_vm0, %v119_v3, 0.0  ;;  %v269_v24 = vsel %vm156_vm0, %v56_v1, 0.0  ;;  %v273_v31 = vsel %vm156_vm0, %v57_v17, 0.0 }
  0x32   :  { %v201_v26 = vadd.f32 %v200_v14, %v199_v19  ;;  %v258_v59 = vadd.f32 %v257_v49, %v256_v51  ;;  %v265_v14 = vsel %vm156_vm0, %v55_v53, 0.0  ;;  %v120_v19 = vcombine.high %v56_v1, %v56_v1 }
  0x33   :  { %v218_v21 = vsel %vm156_vm0, %v107_v7, 0.0 }
  0x34   :  { %772 = vbcast.lane.b32.xlu1 %v2004_v11, 296  ;;  %v203_v32 = vadd.f32 %v202_v23, %v201_v26  ;;  %v260_v63 = vadd.f32 %v259_v55, %v258_v59  ;;  %v271_v29 = vsel %vm156_vm0, %v120_v19, 0.0 }
  0x36   :  { %v205_v39 = vadd.f32 %v204_v28, %v203_v32  ;;  %v262_v13 = vadd.f32 %v261_v61, %v260_v63  ;;  %v121_v28 = vcombine.high %v57_v17, %v57_v17 }
  0x38   :  { %334 = vbcast.lane.b32.xlu1 %v1996_v8, 320  ;;  %v207_v45 = vadd.f32 %v206_v37, %v205_v39  ;;  %v264_v15 = vadd.f32 %v263_v4, %v262_v13  ;;  %v275_v35 = vsel %vm156_vm0, %v121_v28, 0.0  ;;  %v277_v37 = vsel %vm156_vm0, %v58_v27, 0.0 }
  0x39   :  { %v123_v39 = vcombine.high %v59_v33, %v59_v33 }
  0x3a   :  { %v209_v50 = vadd.f32 %v208_v41, %v207_v45  ;;  %v266_v23 = vadd.f32 %v265_v14, %v264_v15 }
  0x3b   :  { %v283_v44 = vsel %vm156_vm0, %v123_v39, 0.0  ;;  %vm653_vm0 = vcmask 1048512  }
  0x3c   :  { %1181 = vbcast.lane.b32.xlu1 %v2015_v18, 288  ;;  %v211_v57 = vadd.f32 %v210_v48, %v209_v50  ;;  %v268_v25 = vadd.f32 %v267_v20, %v266_v23 }
  0x3e   :  { %v213_v62 = vadd.f32 %v212_v52, %v211_v57  ;;  %v270_v30 = vadd.f32 %v269_v24, %v268_v25 }
  0x40   :  { %780 = vbcast.lane.b32.xlu1 %v2004_v11, 312  ;;  %v215_v9 = vadd.f32 %v214_v60, %v213_v62  ;;  %v272_v32 = vadd.f32 %v271_v29, %v270_v30 }
  0x42   :  { %v217_v16 = vadd.f32 %v216_v10, %v215_v9  ;;  %v274_v36 = vadd.f32 %v273_v31, %v272_v32 }
  0x44   :  { %342 = vbcast.lane.b32.xlu1 %v1996_v8, 336  ;;  %v219_v26 = vadd.f32 %v218_v21, %v217_v16  ;;  %v276_v38 = vadd.f32 %v275_v35, %v274_v36 }
  0x46   :  { %v278_v41 = vadd.f32 %v277_v37, %v276_v38 }
  0x48   :  { %1189 = vbcast.lane.b32.xlu1 %v2015_v18, 304  ;;  %v280_v43 = vadd.f32 %v279_v40, %v278_v41 }
  0x4a   :  { %v282_v45 = vadd.f32 %v281_v42, %v280_v43 }
  0x4c   :  { %788 = vbcast.lane.b32.xlu1 %v2004_v11, 328  ;;  %v284_v46 = vadd.f32 %v283_v44, %v282_v45 }
  0x4f   :  { %220 = vadd.xlane.f32.xlu0 %v219_v26 }
  0x50   :  { %350 = vbcast.lane.b32.xlu1 %v1996_v8, 352 }
  0x53   :  { %285 = vadd.xlane.f32.xlu0 %v284_v46 }
  0x54   :  { %1197 = vbcast.lane.b32.xlu1 %v2015_v18, 320 }
  0x58   :  { %796 = vbcast.lane.b32.xlu1 %v2004_v11, 344 }
  0x5c   :  { %358 = vbcast.lane.b32.xlu1 %v1996_v8, 368 }
  0x60   :  { %1205 = vbcast.lane.b32.xlu1 %v2015_v18, 336 }
  0x64   :  { %804 = vbcast.lane.b32.xlu1 %v2004_v11, 360 }
  0x68   :  { %808 = vbcast.lane.b32.xlu1 %v2004_v11, 368 }
  0x69   :  { %1193 = vbcast.lane.b32.xlu0 %v2015_v18, 312 }
  0x6c   :  { %812 = vbcast.lane.b32.xlu1 %v2004_v11, 376 }
  0x6d   :  { %792 = vbcast.lane.b32.xlu0 %v2004_v11, 336 }
  0x70   :  { %1221 = vbcast.lane.b32.xlu1 %v2015_v18, 368 }
  0x71   :  { %354 = vbcast.lane.b32.xlu0 %v1996_v8, 360 }
  0x75   :  { %1201 = vbcast.lane.b32.xlu0 %v2015_v18, 328 }
  0x79   :  { %800 = vbcast.lane.b32.xlu0 %v2004_v11, 352 }
  0x7a   :  { %v311_v48 = vpop.permute.xlu0 %310 }
  0x7d   :  { %362 = vbcast.lane.b32.xlu0 %v1996_v8, 376  ;;  %v303_v8 = vpop.permute.xlu1 %302 }
  0x7e   :  { %v2164_v49 = vpop.permute.xlu0 %764 }
  0x81   :  { %1209 = vbcast.lane.b32.xlu0 %v2015_v18, 344  ;;  %v307_v54 = vpop.permute.xlu1 %306 }
  0x82   :  { %v2166_v50 = vpop.permute.xlu0 %1169 }
  0x85   :  { %1213 = vbcast.lane.b32.xlu0 %v2015_v18, 352  ;;  %v315_v56 = vpop.permute.xlu1 %314 }
  0x86   :  { %v2168_v51 = vpop.permute.xlu0 %768 }
  0x89   :  { %1217 = vbcast.lane.b32.xlu0 %v2015_v18, 360 }
  0x8a   :  { %v2170_v52 = vpop.permute.xlu0 %330 }
  0x8d   :  { %1225 = vbcast.lane.b32.xlu0 %v2015_v18, 376  ;;  %v753_v18 = vpop.permute.xlu1 %752 }
  0x8e   :  { %v2172_v11 = vpop.permute.xlu0 %1177 }
  0x91   :  { %v757_v59 = vpop.permute.xlu1 %756 }
  0x92   :  { %v2174_v53 = vpop.permute.xlu0 %776 }
  0x95   :  { %v319_v63 = vpop.permute.xlu1 %318 }
  0x96   :  { %v2176_v55 = vpop.permute.xlu0 %338 }
  0x99   :  { %v761_v7 = vpop.permute.xlu1 %760 }
  0x9a   :  { %v2178_v57 = vpop.permute.xlu0 %1185 }
  0x9d   :  { %v323_v14 = vpop.permute.xlu1 %322 }
  0x9e   :  { %v2180_v58 = vpop.permute.xlu0 %784 }
  0xa1   :  { %v1166_v21 = vpop.permute.xlu1 %1165 }
  0xa2   :  { %v2182_v60 = vpop.permute.xlu0 %346 }
  0xdc   :  { %v221_v61 = vpop.xlane.xlu0 %220 }
  0xdd   :  { %v2185_v62 = vrot.slane %v221_v61, %v1990_v5  ;;  %v2191_v9 = vrot.slane %v221_v61, %v1993_v6  ;;  %v2211_v29 = vrot.slane %v221_v61, %v2007_v12 }
  0xdf   :  { %v381_v1 = vmul.f32 %v307_v54, %v2185_v62  ;;  %v380_v3 = vmul.f32 %v303_v8, %v2185_v62  ;;  %v382_v4 = vmul.f32 %v311_v48, %v2185_v62  ;;  %v383_v10 = vmul.f32 %v315_v56, %v2185_v62 }
  0xe0   :  { %v286_v13 = vpop.xlane.xlu0 %285  ;;  %v830_v17 = vmul.f32 %v753_v18, %v2191_v9  ;;  %v384_v23 = vmul.f32 %v319_v63, %v2185_v62  ;;  %v832_v24 = vmul.f32 %v761_v7, %v2191_v9  ;;  %v385_v26 = vmul.f32 %v323_v14, %v2185_v62 }
  0xe1   :  { %452 = vperm.xlu0 %1930, %v381_v1   ;;  %449 = vperm.xlu1 %1929, %v380_v3   ;;  %v2195_v15 = vrot.slane %v286_v13, %v1990_v5  ;;  %v2198_v16 = vrot.slane %v286_v13, %v1993_v6  ;;  %v327_v6 = vpop.permute.xlu1 %326  ;;  %v831_v28 = vmul.f32 %v757_v59, %v2191_v9 }
  0xe2   :  { %v833_v30 = vmul.f32 %v2164_v49, %v2191_v9  ;;  %v2217_v33 = vrot.slane %v286_v13, %v2007_v12  ;;  %v1243_v34 = vmul.f32 %v1166_v21, %v2211_v29  ;;  %v386_v39 = vmul.f32 %v327_v6, %v2185_v62 }
  0xe3   :  { %v396_v19 = vmul.f32 %v303_v8, %v2195_v15  ;;  %v846_v20 = vmul.f32 %v753_v18, %v2198_v16  ;;  %v397_v22 = vmul.f32 %v307_v54, %v2195_v15  ;;  %v398_v5 = vmul.f32 %v311_v48, %v2195_v15 }
  0xe4   :  { %v399_v25 = vmul.f32 %v315_v56, %v2195_v15  ;;  %v847_v31 = vmul.f32 %v757_v59, %v2198_v16  ;;  %v400_v35 = vmul.f32 %v319_v63, %v2195_v15  ;;  %v1259_v36 = vmul.f32 %v1166_v21, %v2217_v33  ;;  %v2252_v63 = vpop.permute.xlu0 %1193 }
  0xe5   :  { %455 = vperm.xlu0 %1930, %v382_v4   ;;  %497 = vperm.xlu1 %1929, %v396_v19   ;;  %v1174_v27 = vpop.permute.xlu1 %1173  ;;  %v848_v38 = vmul.f32 %v761_v7, %v2198_v16  ;;  %v401_v40 = vmul.f32 %v323_v14, %v2195_v15  ;;  %v834_v41 = vmul.f32 %v2168_v51, %v2191_v9 }
  0xe6   :  { %v849_v42 = vmul.f32 %v2164_v49, %v2198_v16  ;;  %v1245_v43 = vmul.f32 %v1174_v27, %v2211_v29  ;;  %v1244_v45 = vmul.f32 %v2166_v50, %v2211_v29  ;;  %v387_v46 = vmul.f32 %v2170_v52, %v2185_v62 }
  0xe7   :  { %v1260_v47 = vmul.f32 %v2166_v50, %v2217_v33  ;;  %v402_v8 = vmul.f32 %v327_v6, %v2195_v15  ;;  %v1246_v54 = vmul.f32 %v2172_v11, %v2211_v29  ;;  %v850_v18 = vmul.f32 %v2168_v51, %v2198_v16 }
  0xe8   :  { %v1261_v59 = vmul.f32 %v1174_v27, %v2217_v33  ;;  %v836_v1 = vmul.f32 %v2174_v53, %v2191_v9  ;;  %v403_v3 = vmul.f32 %v2170_v52, %v2195_v15  ;;  %v2261_v7 = vpop.permute.xlu0 %792  ;;  %v389_v13 = vmul.f32 %v2176_v55, %v2185_v62 }
  0xe9   :  { %458 = vperm.xlu0 %1930, %v383_v10   ;;  %500 = vperm.xlu1 %1929, %v397_v22   ;;  %v773_v32 = vpop.permute.xlu1 %772  ;;  %v1262_v14 = vmul.f32 %v2172_v11, %v2217_v33  ;;  %v1248_v21 = vmul.f32 %v2178_v57, %v2211_v29  ;;  %v852_v11 = vmul.f32 %v2174_v53, %v2198_v16 }
  0xea   :  { %v835_v49 = vmul.f32 %v773_v32, %v2191_v9  ;;  %v851_v10 = vmul.f32 %v773_v32, %v2198_v16  ;;  %v405_v27 = vmul.f32 %v2176_v55, %v2195_v15  ;;  %v391_v32 = vmul.f32 %v2182_v60, %v2185_v62 }
  0xeb   :  { %v1264_v55 = vmul.f32 %v2178_v57, %v2217_v33 }
  0xed   :  { %895 = vperm.xlu0 %1930, %v830_v17   ;;  %503 = vperm.xlu1 %1929, %v398_v5   ;;  %v335_v37 = vpop.permute.xlu1 %334  ;;  %v2270_v17 = vpop.permute.xlu0 %354 }
  0xee   :  { %v388_v50 = vmul.f32 %v335_v37, %v2185_v62 }
  0xf1   :  { %943 = vperm.xlu0 %1930, %v846_v20   ;;  %506 = vperm.xlu1 %1929, %v399_v25   ;;  %v1182_v12 = vpop.permute.xlu1 %1181  ;;  %v404_v20 = vmul.f32 %v335_v37, %v2195_v15 }
  0xf2   :  { %v1247_v51 = vmul.f32 %v1182_v12, %v2211_v29  ;;  %v1263_v6 = vmul.f32 %v1182_v12, %v2217_v33 }
  0xf5   :  { %461 = vperm.xlu0 %1930, %v384_v23   ;;  %898 = vperm.xlu1 %1929, %v831_v28   ;;  %v2230_v44 = vpop.permute.xlu1 %780  ;;  %v2279_v23 = vpop.permute.xlu0 %1201 }
  0xf6   :  { %v837_v19 = vmul.f32 %v2230_v44, %v2191_v9 }
  0xf9   :  { %901 = vperm.xlu0 %1930, %v832_v24   ;;  %946 = vperm.xlu1 %1929, %v847_v31   ;;  %v2238_v48 = vpop.permute.xlu1 %342  ;;  %v2288_v25 = vpop.permute.xlu0 %800  ;;  %v853_v31 = vmul.f32 %v2230_v44, %v2198_v16  ;;  %v2331_v44 = vand.u32 127, %v288_v0 }
  0xfa   :  { %v390_v5 = vmul.f32 %v2238_v48, %v2185_v62  ;;  %v406_v37 = vmul.f32 %v2238_v48, %v2195_v15 }
  0xfd   :  { %464 = vperm.xlu0 %1930, %v385_v26   ;;  %509 = vperm.xlu1 %1929, %v400_v35   ;;  %v2244_v56 = vpop.permute.xlu1 %1189  ;;  %v838_v26 = vmul.f32 %v2180_v58, %v2191_v9 }
  0xfe   :  { %v1249_v53 = vmul.f32 %v2244_v56, %v2211_v29 }
 0x101   :  { %904 = vperm.xlu0 %1930, %v833_v30   ;;  %949 = vperm.xlu1 %1929, %v848_v38   ;;  %v2250_v61 = vpop.permute.xlu1 %788  ;;  %v2298_v30 = vpop.permute.xlu0 %362  ;;  %v1250_v38 = vmul.f32 %v2252_v63, %v2211_v29 }
 0x102   :  { %v855_v0 = vmul.f32 %v2250_v61, %v2198_v16 }
 0x105   :  { %1308 = vperm.xlu0 %1930, %v1243_v34   ;;  %512 = vperm.xlu1 %1929, %v401_v40   ;;  %v2259_v4 = vpop.permute.xlu1 %350  ;;  %v2308_v35 = vpop.permute.xlu0 %1209  ;;  %v854_v40 = vmul.f32 %v2180_v58, %v2198_v16  ;;  %v840_v58 = vmul.f32 %v2261_v7, %v2191_v9 }
 0x106   :  { %v392_v12 = vmul.f32 %v2259_v4, %v2185_v62 }
 0x109   :  { %1356 = vperm.xlu0 %1930, %v1259_v36   ;;  %952 = vperm.xlu1 %1929, %v849_v42   ;;  %v2268_v52 = vpop.permute.xlu1 %1197  ;;  %v839_v36 = vmul.f32 %v2250_v61, %v2191_v9  ;;  %v2318_v57 = vpop.permute.xlu0 %1213 }
 0x10d   :  { %467 = vperm.xlu0 %1930, %v386_v39   ;;  %1311 = vperm.xlu1 %1929, %v1244_v45   ;;  %v2277_v22 = vpop.permute.xlu1 %796  ;;  %v407_v45 = vmul.f32 %v2182_v60, %v2195_v15  ;;  %v2349_v60 = vsub.s32 %v2331_v44, %v1984_v2 }
 0x111   :  { %907 = vperm.xlu0 %1930, %v834_v41   ;;  %1359 = vperm.xlu1 %1929, %v1260_v47   ;;  %v2286_v24 = vpop.permute.xlu1 %358  ;;  %v1265_v41 = vmul.f32 %v2244_v56, %v2217_v33  ;;  %v1251_v47 = vmul.f32 %v2268_v52, %v2211_v29  ;;  %v393_v56 = vmul.f32 %v2270_v17, %v2185_v62 }
 0x115   :  { %1314 = vperm.xlu0 %1930, %v1245_v43   ;;  %515 = vperm.xlu1 %1929, %v402_v8   ;;  %v2296_v28 = vpop.permute.xlu1 %1205  ;;  %v2328_v43 = vpop.permute.xlu0 %1217  ;;  %v557_v8 = vadd.s32 4294967280, %v2331_v44 }
 0x117   :  { %v2359_v61 = vsub.s32 %v557_v8, %v1984_v2 }
 0x119   :  { %470 = vperm.xlu0 %1930, %v387_v46   ;;  %955 = vperm.xlu1 %1929, %v850_v18   ;;  %v2306_v34 = vpop.permute.xlu1 %804  ;;  %v550_v46 = vadd.s32 4294967288, %v2331_v44  ;;  %v1266_v18 = vmul.f32 %v2252_v63, %v2217_v33  ;;  %v408_v63 = vmul.f32 %v2259_v4, %v2195_v15 }
 0x11d   :  { %910 = vperm.xlu0 %1930, %v835_v49   ;;  %1362 = vperm.xlu1 %1929, %v1261_v59   ;;  %v2316_v39 = vpop.permute.xlu1 %808  ;;  %v2342_v49 = vpop.permute.xlu0 %1225 }
 0x121   :  { %1317 = vperm.xlu0 %1930, %v1246_v54   ;;  %518 = vperm.xlu1 %1929, %v403_v3   ;;  %v2326_v42 = vpop.permute.xlu1 %812  ;;  %v2352_v54 = vsub.s32 %v550_v46, %v1984_v2 }
 0x125   :  { %473 = vperm.xlu0 %1930, %v388_v50   ;;  %958 = vperm.xlu1 %1929, %v851_v10   ;;  %v2340_v48 = vpop.permute.xlu1 %1221  ;;  %v841_v10 = vmul.f32 %v2277_v22, %v2191_v9 }
 0x129   :  { %913 = vperm.xlu0 %1930, %v836_v1   ;;  %1365 = vperm.xlu1 %1929, %v1262_v14   ;;  %v564_v1 = vadd.s32 4294967272, %v2331_v44 }
 0x12d   :  { %1320 = vperm.xlu0 %1930, %v1247_v51   ;;  %521 = vperm.xlu1 %1929, %v404_v20  }
 0x131   :  { %476 = vperm.xlu0 %1930, %v389_v13   ;;  %961 = vperm.xlu1 %1929, %v852_v11  }
 0x135   :  { %916 = vperm.xlu0 %1930, %v837_v19   ;;  %1368 = vperm.xlu1 %1929, %v1263_v6   ;;  %v2370_v19 = vsub.s32 %v564_v1, %v1984_v2 }
 0x139   :  { %1323 = vperm.xlu0 %1930, %v1248_v21   ;;  %524 = vperm.xlu1 %1929, %v405_v27   ;;  %v1252_v21 = vmul.f32 %v2279_v23, %v2211_v29  ;;  %v394_v27 = vmul.f32 %v2286_v24, %v2185_v62 }
 0x13d   :  { %479 = vperm.xlu0 %1930, %v390_v5   ;;  %964 = vperm.xlu1 %1929, %v853_v31   ;;  %v856_v5 = vmul.f32 %v2261_v7, %v2198_v16  ;;  %v842_v7 = vmul.f32 %v2288_v25, %v2191_v9 }
 0x141   :  { %919 = vperm.xlu0 %1930, %v838_v26   ;;  %1371 = vperm.xlu1 %1929, %v1264_v55   ;;  %v571_v55 = vadd.s32 4294967264, %v2331_v44 }
 0x145   :  { %1326 = vperm.xlu0 %1930, %v1249_v53   ;;  %527 = vperm.xlu1 %1929, %v406_v37   ;;  %v1267_v53 = vmul.f32 %v2268_v52, %v2217_v33 }
 0x149   :  { %482 = vperm.xlu0 %1930, %v391_v32   ;;  %967 = vperm.xlu1 %1929, %v854_v40   ;;  %v2390_v40 = vsub.s32 %v571_v55, %v1984_v2 }
 0x14d   :  { %922 = vperm.xlu0 %1930, %v839_v36   ;;  %1374 = vperm.xlu1 %1929, %v1265_v41   ;;  %v409_v36 = vmul.f32 %v2270_v17, %v2195_v15  ;;  %v1253_v41 = vmul.f32 %v2296_v28, %v2211_v29 }
 0x151   :  { %1329 = vperm.xlu0 %1930, %v1250_v38   ;;  %530 = vperm.xlu1 %1929, %v407_v45   ;;  %v857_v45 = vmul.f32 %v2277_v22, %v2198_v16 }
 0x155   :  { %485 = vperm.xlu0 %1930, %v392_v12   ;;  %970 = vperm.xlu1 %1929, %v855_v0   ;;  %v578_v0 = vadd.s32 4294967256, %v2331_v44 }
 0x159   :  { %925 = vperm.xlu0 %1930, %v840_v58   ;;  %1377 = vperm.xlu1 %1929, %v1266_v18  }
 0x15d   :  { %1332 = vperm.xlu0 %1930, %v1251_v47   ;;  %533 = vperm.xlu1 %1929, %v408_v63   ;;  %v410_v63 = vmul.f32 %v2286_v24, %v2195_v15  ;;  %v858_v24 = vmul.f32 %v2288_v25, %v2198_v16 }
 0x160   :  { %v450_v50 = vpop.permute.xlu1 %449  ;;  %v453_v59 = vpop.permute.xlu0 %452 }
 0x161   :  { %488 = vperm.xlu0 %1930, %v393_v56   ;;  %v549_v3 = vrot.slane %v450_v50, %v2349_v60  ;;  %v554_v51 = vrot.slane %v453_v59, %v2352_v54  ;;  %973 = vperm.xlu1 %1929, %v856_v5   ;;  %v395_v56 = vmul.f32 %v2298_v30, %v2185_v62 }
 0x162   :  { %v1268_v50 = vmul.f32 %v2279_v23, %v2217_v33  ;;  %v1254_v5 = vmul.f32 %v2308_v35, %v2211_v29 }
 0x163   :  { %v556_v20 = vsel %vm555_vm1, %v554_v51, %v549_v3  ;;  %v2409_v3 = vsub.s32 %v578_v0, %v1984_v2 }
 0x164   :  { %v456_v13 = vpop.permute.xlu0 %455  ;;  %v498_v32 = vpop.permute.xlu1 %497 }
 0x165   :  { %v561_v14 = vrot.slane %v456_v13, %v2359_v61  ;;  %928 = vperm.xlu0 %1930, %v841_v10   ;;  %1380 = vperm.xlu1 %1929, %v1267_v53   ;;  %v658_v52 = vrot.slane %v498_v32, %v2349_v60  ;;  %v843_v10 = vmul.f32 %v2306_v34, %v2191_v9 }
 0x167   :  { %v563_v11 = vsel %vm562_vm2, %v561_v14, %v556_v20 }
 0x168   :  { %v459_v4 = vpop.permute.xlu0 %458  ;;  %v501_v38 = vpop.permute.xlu1 %500 }
 0x169   :  { %v568_v6 = vrot.slane %v459_v4, %v2370_v19  ;;  %1335 = vperm.xlu0 %1930, %v1252_v21   ;;  %v662_v12 = vrot.slane %v501_v38, %v2352_v54  ;;  %536 = vperm.xlu1 %1929, %v409_v36   ;;  %v844_v36 = vmul.f32 %v2316_v39, %v2191_v9 }
 0x16a   :  { %v1269_v38 = vmul.f32 %v2296_v28, %v2217_v33 }
 0x16b   :  { %v570_v26 = vsel %vm569_vm3, %v568_v6, %v563_v11  ;;  %v663_v58 = vsel %vm555_vm1, %v662_v12, %v658_v52 }
 0x16c   :  { %v896_v31 = vpop.permute.xlu0 %895  ;;  %v504_v46 = vpop.permute.xlu1 %503 }
 0x16d   :  { %491 = vperm.xlu0 %1930, %v394_v27   ;;  %v667_v8 = vrot.slane %v504_v46, %v2359_v61  ;;  %976 = vperm.xlu1 %1929, %v857_v45   ;;  %v993_v21 = vrot.slane %v896_v31, %v2349_v60  ;;  %v411_v45 = vmul.f32 %v2298_v30, %v2195_v15 }
 0x16e   :  { %v859_v15 = vmul.f32 %v2306_v34, %v2198_v16 }
 0x16f   :  { %v668_v22 = vsel %vm562_vm2, %v667_v8, %v663_v58  ;;  %v1255_v58 = vmul.f32 %v2318_v57, %v2211_v29  ;;  %v845_v8 = vmul.f32 %v2326_v42, %v2191_v9  ;;  %v1270_v9 = vmul.f32 %v2308_v35, %v2217_v33 }
 0x170   :  { %v944_v37 = vpop.permute.xlu0 %943  ;;  %v507_v1 = vpop.permute.xlu1 %506 }
 0x171   :  { %931 = vperm.xlu0 %1930, %v842_v7   ;;  %v672_v51 = vrot.slane %v507_v1, %v2370_v19  ;;  %1383 = vperm.xlu1 %1929, %v1268_v50   ;;  %v1072_v31 = vrot.slane %v944_v37, %v2349_v60 }
 0x173   :  { %v673_v62 = vsel %vm569_vm3, %v672_v51, %v668_v22 }
 0x174   :  { %v462_v17 = vpop.permute.xlu0 %461  ;;  %v899_v13 = vpop.permute.xlu1 %898 }
 0x175   :  { %v575_v47 = vrot.slane %v462_v17, %v2390_v40  ;;  %1338 = vperm.xlu0 %1930, %v1253_v41   ;;  %v997_v11 = vrot.slane %v899_v13, %v2352_v54  ;;  %539 = vperm.xlu1 %1929, %v410_v63   ;;  %v585_v41 = vadd.s32 4294967248, %v2331_v44  ;;  %v592_v13 = vadd.s32 4294967240, %v2331_v44 }
 0x177   :  { %v577_v18 = vsel %vm576_vm4, %v575_v47, %v570_v26  ;;  %v998_v6 = vsel %vm555_vm1, %v997_v11, %v993_v21  ;;  %v2449_v47 = vsub.s32 %v585_v41, %v1984_v2  ;;  %v1257_v21 = vmul.f32 %v2340_v48, %v2211_v29 }
 0x178   :  { %v902_v59 = vpop.permute.xlu0 %901  ;;  %v947_v27 = vpop.permute.xlu1 %946 }
 0x179   :  { %494 = vperm.xlu0 %1930, %v395_v56   ;;  %v1002_v14 = vrot.slane %v902_v59, %v2359_v61  ;;  %v1076_v55 = vrot.slane %v947_v27, %v2352_v54  ;;  %979 = vperm.xlu1 %1929, %v858_v24   ;;  %v1256_v59 = vmul.f32 %v2328_v43, %v2211_v29 }
 0x17b   :  { %v1003_v53 = vsel %vm562_vm2, %v1002_v14, %v998_v6  ;;  %v1077_v25 = vsel %vm555_vm1, %v1076_v55, %v1072_v31  ;;  %v1961_v14 = vmov 0.0|0.0   ;;  %v1566_v6 = vld [vmem:[%s2874_s1 + $0x18] sm:$0xff] }
 0x17c   :  { %v465_v23 = vpop.permute.xlu0 %464  ;;  %v510_v12 = vpop.permute.xlu1 %509  ;;  %1876 = vmatprep.subr.bf16.mxu0 %v1961_v14  ;;  %1900 = vmatprep.subr.bf16.mxu1 %v1961_v14 }
 0x17d   :  { %v582_v20 = vrot.slane %v465_v23, %v2409_v3  ;;  %934 = vperm.xlu0 %1930, %v843_v10   ;;  %v677_v37 = vrot.slane %v510_v12, %v2390_v40  ;;  %1386 = vperm.xlu1 %1929, %v1269_v38   ;;  %v1564_v10 = vld [vmem:[%s2874_s1 + $0x8] sm:$0xff]  ;;  %v1569_v12 = vld [vmem:[%s2874_s1 + $0x30] sm:$0xff] }
 0x17f   :  { %v584_v4 = vsel %vm583_vm5, %v582_v20, %v577_v18  ;;  %v678_v17 = vsel %vm576_vm4, %v677_v37, %v673_v62  ;;  %v1565_v62 = vld [vmem:[%s2874_s1 + $0x10] sm:$0xff] }
 0x180   :  { %v905_v26 = vpop.permute.xlu0 %904  ;;  %v950_v28 = vpop.permute.xlu1 %949  ;;  %v1877_v35 = vpack.c.bf16 %v1565_v62, %v1564_v10 }
 0x181   :  { %v1007_v32 = vrot.slane %v905_v26, %v2370_v19  ;;  %1341 = vperm.xlu0 %1930, %v1254_v5   ;;  %v1081_v0 = vrot.slane %v950_v28, %v2359_v61  ;;  %542 = vperm.xlu1 %1929, %v411_v45   ;;  %v1567_v26 = vld [vmem:[%s2874_s1 + $0x20] sm:$0xff] }
 0x182   :  { %1878 = vmatpush3.bf16.msra.mxu0 %v1877_v35  ;;  %v1880_v31 = vpack.c.bf16 %v1567_v26, %v1566_v6  ;;  %v1574_v35 = vld [vmem:[%s2874_s1 + $0x58] sm:$0xff] }
 0x183   :  { %v1008_v7 = vsel %vm569_vm3, %v1007_v32, %v1003_v53  ;;  %v1082_v56 = vsel %vm562_vm2, %v1081_v0, %v1077_v25  ;;  %1879 = vmatprep.subr.bf16.mxu0 %v1961_v14  ;;  %v2495_v32 = vsub.s32 %v592_v13, %v1984_v2  ;;  %v861_v0 = vmul.f32 %v2326_v42, %v2198_v16 }
 0x184   :  { %v2437_v52 = vpop.permute.xlu0 %1308  ;;  %v513_v18 = vpop.permute.xlu1 %512  ;;  %v1272_v42 = vmul.f32 %v2328_v43, %v2217_v33 }
 0x185   :  { %937 = vperm.xlu0 %1930, %v844_v36   ;;  %v682_v22 = vrot.slane %v513_v18, %v2409_v3  ;;  %982 = vperm.xlu1 %1929, %v859_v15   ;;  %v1271_v36 = vmul.f32 %v2318_v57, %v2217_v33  ;;  %v599_v15 = vadd.s32 4294967232, %v2331_v44 }
 0x186   :  { %1881 = vmatpush3.bf16.msra.mxu0 %v1880_v31 }
 0x187   :  { %v2465_v51 = vsel %vm583_vm5, %v682_v22, %v678_v17  ;;  %1882 = vmatprep.subr.bf16.mxu0 %v1961_v14  ;;  %v2545_v10 = vsub.s32 %v599_v15, %v1984_v2 }
 0x188   :  { %v2446_v46 = vpop.permute.xlu0 %1356  ;;  %v953_v63 = vpop.permute.xlu1 %952 }
 0x189   :  { %1344 = vperm.xlu0 %1930, %v1255_v58   ;;  %v1086_v20 = vrot.slane %v953_v63, %v2370_v19  ;;  %1389 = vperm.xlu1 %1929, %v1270_v9   ;;  %v1485_v58 = vrot.slane %v2446_v46, %v2349_v60  ;;  %v1273_v63 = vmul.f32 %v2340_v48, %v2217_v33 }
 0x18b   :  { %v2482_v5 = vsel %vm569_vm3, %v1086_v20, %v1082_v56  ;;  %v1570_v56 = vld [vmem:[%s2874_s1 + $0x38] sm:$0xff]  ;;  %v1575_v20 = vld [vmem:[%s2874_s1 + $0x60] sm:$0xff] }
 0x18c   :  { %v468_v30 = vpop.permute.xlu0 %467  ;;  %v1312_v27 = vpop.permute.xlu1 %1311 }
 0x18d   :  { %v589_v50 = vrot.slane %v468_v30, %v2449_v47  ;;  %940 = vperm.xlu0 %1930, %v845_v8   ;;  %v1410_v55 = vrot.slane %v1312_v27, %v2352_v54  ;;  %v1576_v27 = vld [vmem:[%s2874_s1 + $0x68] sm:$0xff] }
 0x18f   :  { %v591_v1 = vsel %vm590_vm6, %v589_v50, %v584_v4  ;;  %v860_v4 = vmul.f32 %v2316_v39, %v2198_v16  ;;  %v1406_v39 = vrot.slane %v2437_v52, %v2349_v60  ;;  %v1568_v52 = vld [vmem:[%s2874_s1 + $0x28] sm:$0xff]  ;;  %v1571_v60 = vld [vmem:[%s2874_s1 + $0x40] sm:$0xff] }
 0x190   :  { %v908_v34 = vpop.permute.xlu0 %907  ;;  %v1360_v41 = vpop.permute.xlu1 %1359  ;;  %v1883_v57 = vpack.c.bf16 %v1569_v12, %v1568_v52  ;;  %v1886_v30 = vpack.c.bf16 %v1571_v60, %v1570_v56 }
 0x191   :  { %v1012_v23 = vrot.slane %v908_v34, %v2390_v40  ;;  %1347 = vperm.xlu0 %1930, %v1256_v59   ;;  %985 = vperm.xlu1 %1929, %v860_v4   ;;  %v1411_v25 = vsel %vm555_vm1, %v1410_v55, %v1406_v39  ;;  %v1489_v45 = vrot.slane %v1360_v41, %v2352_v54  ;;  %v1572_v59 = vld [vmem:[%s2874_s1 + $0x48] sm:$0xff]  ;;  %v606_v39 = vadd.s32 4294967224, %v2331_v44 }
 0x192   :  { %1884 = vmatpush3.bf16.msra.mxu0 %v1883_v57  ;;  %v1892_v4 = vpack.c.bf16 %v1575_v20, %v1574_v35 }
 0x193   :  { %v1013_v11 = vsel %vm576_vm4, %v1012_v23, %v1008_v7  ;;  %v1258_v7 = vmul.f32 %v2342_v49, %v2211_v29  ;;  %v1490_v28 = vsel %vm555_vm1, %v1489_v45, %v1485_v58  ;;  %1885 = vmatprep.subr.bf16.mxu0 %v1961_v14  ;;  %v2587_v41 = vsub.s32 %v606_v39, %v1984_v2 }
 0x194   :  { %v1315_v24 = vpop.permute.xlu0 %1314  ;;  %v516_v54 = vpop.permute.xlu1 %515  ;;  %vm734_vm1 = vcmask 1041409  }
 0x195   :  { %v1415_v53 = vrot.slane %v1315_v24, %v2359_v61  ;;  %1350 = vperm.xlu0 %1930, %v1257_v21   ;;  %1392 = vperm.xlu1 %1929, %v1271_v36   ;;  %v687_v18 = vrot.slane %v516_v54, %v2449_v47  ;;  %v1274_v24 = vmul.f32 %v2342_v49, %v2217_v33 }
 0x196   :  { %1887 = vmatpush3.bf16.msra.mxu0 %v1886_v30 }
 0x197   :  { %v1416_v29 = vsel %vm562_vm2, %v1415_v53, %v1411_v25  ;;  %v688_v50 = vsel %vm590_vm6, %v687_v18, %v2465_v51  ;;  %1888 = vmatprep.subr.bf16.mxu0 %v1961_v14  ;;  %v1578_v25 = vld [vmem:[%s2874_s1 + $0x78] sm:$0xff] }
 0x198   :  { %v471_v38 = vpop.permute.xlu0 %470  ;;  %v956_v9 = vpop.permute.xlu1 %955 }
 0x199   :  { %v596_v37 = vrot.slane %v471_v38, %v2495_v32  ;;  %1353 = vperm.xlu0 %1930, %v1258_v7   ;;  %988 = vperm.xlu1 %1929, %v861_v0   ;;  %v1091_v51 = vrot.slane %v956_v9, %v2390_v40  ;;  %v1579_v38 = vld [vmem:[%s2874_s1 + $0x80] sm:$0xff]  ;;  %v1656_v0 = vld [vmem:[%s2874_s1 + $0x90] sm:$0xff] }
 0x19b   :  { %v598_v17 = vsel %vm597_vm7, %v596_v37, %v591_v1  ;;  %v1573_v1 = vld [vmem:[%s2874_s1 + $0x50] sm:$0xff]  ;;  %v1092_v23 = vsel %vm576_vm4, %v1091_v51, %v2482_v5  ;;  %v1963_v37 = vmov 0.0  }
 0x19c   :  { %v911_v8 = vpop.permute.xlu0 %910  ;;  %v1889_v43 = vpack.c.bf16 %v1573_v1, %v1572_v59  ;;  %v1363_v21 = vpop.permute.xlu1 %1362  ;;  %1838 = vmatprep.mubr.msk.f32.mxu0 %vm1962_vm9, %v1963_v37  ;;  %1873 = vmatprep.mubr.msk.f32.mxu1 %vm1962_vm9, %v1963_v37  ;;  %v613_v1 = vadd.s32 4294967216, %v2331_v44  ;;  %v1667_v37 = vld [vmem:[%s2874_s1 + $0xe8] sm:$0xff] }
 0x19d   :  { %v1017_v46 = vrot.slane %v911_v8, %v2409_v3  ;;  %1395 = vperm.xlu1 %1929, %v1272_v42   ;;  %v1494_v48 = vrot.slane %v1363_v21, %v2359_v61  ;;  %v1577_v61 = vld [vmem:[%s2874_s1 + $0x70] sm:$0xff]  ;;  %v1657_v8 = vld [vmem:[%s2874_s1 + $0x98] sm:$0xff] }
 0x19e   :  { %1890 = vmatpush3.bf16.msra.mxu0 %v1889_v43  ;;  %v1895_v55 = vpack.c.bf16 %v1577_v61, %v1576_v27  ;;  %v2629_v20 = vsub.s32 %v613_v1, %v1984_v2 }
 0x19f   :  { %v1018_v16 = vsel %vm583_vm5, %v1017_v46, %v1013_v11  ;;  %1891 = vmatprep.subr.bf16.mxu0 %v1961_v14  ;;  %v1495_v6 = vsel %vm562_vm2, %v1494_v48, %v1490_v28  ;;  %v1655_v28 = vld [vmem:[%s2874_s1 + $0x88] sm:$0xff]  ;;  %v1658_v46 = vld [vmem:[%s2874_s1 + $0xa0] sm:$0xff]  ;;  %vm1745_vm2 = vcmask 1041408  }
 0x1a0   :  { %v1318_v22 = vpop.permute.xlu0 %1317  ;;  %v519_v53 = vpop.permute.xlu1 %518  ;;  %v1901_v54 = vpack.c.bf16 %v1656_v0, %v1655_v28  ;;  %v1904_v18 = vpack.c.bf16 %v1658_v46, %v1657_v8 }
 0x1a1   :  { %v1420_v34 = vrot.slane %v1318_v22, %v2370_v19  ;;  %1398 = vperm.xlu1 %1929, %v1273_v63   ;;  %v692_v33 = vrot.slane %v519_v53, %v2495_v32  ;;  %v1660_v22 = vld [vmem:[%s2874_s1 + $0xb0] sm:$0xff]  ;;  %v1661_v63 = vld [vmem:[%s2874_s1 + $0xb8] sm:$0xff] }
 0x1a2   :  { %1893 = vmatpush3.bf16.msra.mxu0 %v1892_v4  ;;  %1902 = vmatpush3.bf16.msra.mxu1 %v1901_v54 }
 0x1a3   :  { %v1421_v62 = vsel %vm569_vm3, %v1420_v34, %v1416_v29  ;;  %1894 = vmatprep.subr.bf16.mxu0 %v1961_v14  ;;  %v693_v7 = vsel %vm597_vm7, %v692_v33, %v688_v50  ;;  %v1898_v29 = vpack.c.bf16 %v1579_v38, %v1578_v25  ;;  %1903 = vmatprep.subr.bf16.mxu1 %v1961_v14  ;;  %v1659_v50 = vld [vmem:[%s2874_s1 + $0xa8] sm:$0xff]  ;;  %v1665_v33 = vld [vmem:[%s2874_s1 + $0xd8] sm:$0xff] }
 0x1a4   :  { %v474_v13 = vpop.permute.xlu0 %473  ;;  %v959_v52 = vpop.permute.xlu1 %958  ;;  %v1907_v43 = vpack.c.bf16 %v1660_v22, %v1659_v50 }
 0x1a5   :  { %v603_v11 = vrot.slane %v474_v13, %v2545_v10  ;;  %1401 = vperm.xlu1 %1929, %v1274_v24   ;;  %v1096_v57 = vrot.slane %v959_v52, %v2409_v3  ;;  %v1663_v24 = vld [vmem:[%s2874_s1 + $0xc8] sm:$0xff] }
 0x1a6   :  { %1896 = vmatpush3.bf16.msra.mxu0 %v1895_v55  ;;  %1905 = vmatpush3.bf16.msra.mxu1 %v1904_v18 }
 0x1a7   :  { %v605_v5 = vsel %vm604_vm8, %v603_v11, %v598_v17  ;;  %1897 = vmatprep.subr.bf16.mxu0 %v1961_v14  ;;  %v1097_v45 = vsel %vm583_vm5, %v1096_v57, %v1092_v23  ;;  %1906 = vmatprep.subr.bf16.mxu1 %v1961_v14  ;;  %v1662_v23 = vld [vmem:[%s2874_s1 + $0xc0] sm:$0xff]  ;;  %v1668_v57 = vld [vmem:[%s2874_s1 + $0xf0] sm:$0xff] }
 0x1a8   :  { %v914_v26 = vpop.permute.xlu0 %913  ;;  %v1366_v56 = vpop.permute.xlu1 %1365  ;;  %v1910_v4 = vpack.c.bf16 %v1662_v23, %v1661_v63  ;;  %v1919_v8 = vpack.c.bf16 %v1668_v57, %v1667_v37  ;;  %v641_v37 = vadd.s32 4294967184, %v2331_v44  ;;  %v648_v57 = vadd.s32 4294967176, %v2331_v44 }
 0x1a9   :  { %v1022_v31 = vrot.slane %v914_v26, %v2449_v47  ;;  %v1499_v15 = vrot.slane %v1366_v56, %v2370_v19 }
 0x1aa   :  { %1899 = vmatpush3.bf16.msra.mxu0 %v1898_v29  ;;  %1908 = vmatpush3.bf16.msra.mxu1 %v1907_v43 }
 0x1ab   :  { %v1023_v49 = vsel %vm590_vm6, %v1022_v31, %v1018_v16  ;;  %v1500_v16 = vsel %vm569_vm3, %v1499_v15, %v1495_v6  ;;  %1909 = vmatprep.subr.bf16.mxu1 %v1961_v14  ;;  %v1664_v6 = vld [vmem:[%s2874_s1 + $0xd0] sm:$0xff] }
 0x1ac   :  { %v1321_v36 = vpop.permute.xlu0 %1320  ;;  %v522_v59 = vpop.permute.xlu1 %521  ;;  %v1913_v31 = vpack.c.bf16 %v1664_v6, %v1663_v24 }
 0x1ad   :  { %v1425_v12 = vrot.slane %v1321_v36, %v2390_v40  ;;  %v697_v9 = vrot.slane %v522_v59, %v2545_v10  ;;  %v620_v36 = vadd.s32 4294967208, %v2331_v44 }
 0x1ae   :  { %1911 = vmatpush3.bf16.msra.mxu1 %v1910_v4 }
 0x1af   :  { %v1426_v58 = vsel %vm576_vm4, %v1425_v12, %v1421_v62  ;;  %v698_v51 = vsel %vm604_vm8, %v697_v9, %v693_v7  ;;  %1912 = vmatprep.subr.bf16.mxu1 %v1961_v14 }
 0x1b0   :  { %v477_v17 = vpop.permute.xlu0 %476  ;;  %v962_v13 = vpop.permute.xlu1 %961 }
 0x1b1   :  { %v610_v60 = vrot.slane %v477_v17, %v2587_v41  ;;  %v1101_v21 = vrot.slane %v962_v13, %v2449_v47  ;;  %v2666_v17 = vsub.s32 %v620_v36, %v1984_v2 }
 0x1b2   :  { %1914 = vmatpush3.bf16.msra.mxu1 %v1913_v31 }
 0x1b3   :  { %v612_v30 = vsel %vm611_vm10, %v610_v60, %v605_v5  ;;  %v1102_v48 = vsel %vm590_vm6, %v1101_v21, %v1097_v45  ;;  %1915 = vmatprep.subr.bf16.mxu1 %v1961_v14 }
 0x1b4   :  { %v917_v42 = vpop.permute.xlu0 %916  ;;  %v1369_v26 = vpop.permute.xlu1 %1368 }
 0x1b5   :  { %v1027_v19 = vrot.slane %v917_v42, %v2495_v32  ;;  %v1504_v61 = vrot.slane %v1369_v26, %v2390_v40 }
 0x1b7   :  { %v1028_v34 = vsel %vm597_vm7, %v1027_v19, %v1023_v49  ;;  %v1505_v39 = vsel %vm576_vm4, %v1504_v61, %v1500_v16  ;;  %v1666_v49 = vld [vmem:[%s2874_s1 + $0xe0] sm:$0xff] }
 0x1b8   :  { %v1324_v62 = vpop.permute.xlu0 %1323  ;;  %v525_v7 = vpop.permute.xlu1 %524  ;;  %v1916_v52 = vpack.c.bf16 %v1666_v49, %v1665_v33 }
 0x1b9   :  { %v1430_v35 = vrot.slane %v1324_v62, %v2409_v3  ;;  %v702_v25 = vrot.slane %v525_v7, %v2587_v41 }
 0x1ba   :  { %1917 = vmatpush3.bf16.msra.mxu1 %v1916_v52  ;;  %v627_v52 = vadd.s32 4294967200, %v2331_v44 }
 0x1bb   :  { %v1431_v11 = vsel %vm583_vm5, %v1430_v35, %v1426_v58  ;;  %v703_v12 = vsel %vm611_vm10, %v702_v25, %v698_v51  ;;  %1918 = vmatprep.subr.bf16.mxu1 %v1961_v14 }
 0x1bc   :  { %v480_v5 = vpop.permute.xlu0 %479  ;;  %v965_v58 = vpop.permute.xlu1 %964 }
 0x1bd   :  { %v617_v27 = vrot.slane %v480_v5, %v2629_v20  ;;  %v1106_v28 = vrot.slane %v965_v58, %v2495_v32  ;;  %v2730_v58 = vsub.s32 %v627_v52, %v1984_v2 }
 0x1be   :  { %1920 = vmatpush3.bf16.msra.mxu1 %v1919_v8  ;;  %v2738_v8 = vsub.s32 %v641_v37, %v1984_v2 }
 0x1bf   :  { %v619_v53 = vsel %vm618_vm11, %v617_v27, %v612_v30  ;;  %v1107_v56 = vsel %vm597_vm7, %v1106_v28, %v1102_v48  ;;  %1921 = vmatprep.subr.bf16.mxu1 %v1961_v14 }
 0x1c0   :  { %v920_v55 = vpop.permute.xlu0 %919  ;;  %v1372_v54 = vpop.permute.xlu1 %1371 }
 0x1c1   :  { %v1032_v40 = vrot.slane %v920_v55, %v2545_v10  ;;  %v1509_v15 = vrot.slane %v1372_v54, %v2409_v3 }
 0x1c3   :  { %v1033_v38 = vsel %vm604_vm8, %v1032_v40, %v1028_v34  ;;  %v1510_v18 = vsel %vm583_vm5, %v1509_v15, %v1505_v39 }
 0x1c4   :  { %v1327_v29 = vpop.permute.xlu0 %1326  ;;  %v528_v42 = vpop.permute.xlu1 %527 }
 0x1c5   :  { %v1435_v45 = vrot.slane %v1327_v29, %v2449_v47  ;;  %v707_v22 = vrot.slane %v528_v42, %v2629_v20  ;;  %v634_v29 = vadd.s32 4294967192, %v2331_v44 }
 0x1c7   :  { %v1436_v0 = vsel %vm590_vm6, %v1435_v45, %v1431_v11  ;;  %v708_v19 = vsel %vm618_vm11, %v707_v22, %v703_v12 }
 0x1c8   :  { %v483_v60 = vpop.permute.xlu0 %482  ;;  %v968_v1 = vpop.permute.xlu1 %967 }
 0x1c9   :  { %v624_v46 = vrot.slane %v483_v60, %v2666_v17  ;;  %v1111_v34 = vrot.slane %v968_v1, %v2545_v10 }
 0x1cb   :  { %v2675_v30 = vsel %vm625_vm12, %v624_v46, %v619_v53  ;;  %v1112_v14 = vsel %vm604_vm8, %v1111_v34, %v1107_v56  ;;  %v2741_v56 = vsub.s32 %v648_v57, %v1984_v2 }
 0x1cc   :  { %v923_v16 = vpop.permute.xlu0 %922  ;;  %v1375_v62 = vpop.permute.xlu1 %1374 }
 0x1cd   :  { %v1037_v50 = vrot.slane %v923_v16, %v2587_v41  ;;  %v1514_v63 = vrot.slane %v1375_v62, %v2449_v47 }
 0x1cf   :  { %v2682_v59 = vsel %vm611_vm10, %v1037_v50, %v1033_v38  ;;  %v1515_v23 = vsel %vm590_vm6, %v1514_v63, %v1510_v18 }
 0x1d0   :  { %v1330_v3 = vpop.permute.xlu0 %1329  ;;  %v531_v35 = vpop.permute.xlu1 %530 }
 0x1d1   :  { %v1440_v9 = vrot.slane %v1330_v3, %v2495_v32  ;;  %v712_v21 = vrot.slane %v531_v35, %v2666_v17 }
 0x1d3   :  { %v2688_v43 = vsel %vm597_vm7, %v1440_v9, %v1436_v0  ;;  %v713_v11 = vsel %vm625_vm12, %v712_v21, %v708_v19  ;;  %v2735_v0 = vsub.s32 %v634_v29, %v1984_v2 }
 0x1d4   :  { %v486_v51 = vpop.permute.xlu0 %485  ;;  %v971_v48 = vpop.permute.xlu1 %970 }
 0x1d5   :  { %v1116_v5 = vrot.slane %v971_v48, %v2587_v41  ;;  %v631_v60 = vrot.slane %v486_v51, %v2730_v58 }
 0x1d7   :  { %v2701_v24 = vsel %vm611_vm10, %v1116_v5, %v1112_v14  ;;  %v633_v22 = vsel %vm632_vm13, %v631_v60, %v2675_v30 }
 0x1d8   :  { %v2693_v13 = vpop.permute.xlu0 %925  ;;  %v1378_v26 = vpop.permute.xlu1 %1377 }
 0x1d9   :  { %v1519_v47 = vrot.slane %v1378_v26, %v2495_v32  ;;  %v1042_v5 = vrot.slane %v2693_v13, %v2629_v20 }
 0x1db   :  { %v2705_v27 = vsel %vm597_vm7, %v1519_v47, %v1515_v23 }
 0x1dc   :  { %v2697_v4 = vpop.permute.xlu0 %1332  ;;  %v534_v53 = vpop.permute.xlu1 %533 }
 0x1dd   :  { %v717_v54 = vrot.slane %v534_v53, %v2730_v58  ;;  %v414_v53 = vsub.s32 3, %v1984_v2 }
 0x1df   :  { %v718_v19 = vsel %vm632_vm13, %v717_v54, %v713_v11 }
 0x1e0   :  { %v489_v6 = vpop.permute.xlu0 %488  ;;  %v2711_v39 = vpop.permute.xlu1 %973 }
 0x1e1   :  { %v638_v46 = vrot.slane %v489_v6, %v2735_v0  ;;  %v1121_v6 = vrot.slane %v2711_v39, %v2629_v20 }
 0x1e3   :  { %v640_v1 = vsel %vm639_vm14, %v638_v46, %v633_v22 }
 0x1e4   :  { %v2707_v61 = vpop.permute.xlu0 %928  ;;  %v2713_v33 = vpop.permute.xlu1 %1380 }
 0x1e5   :  { %v1047_v26 = vrot.slane %v2707_v61, %v2666_v17  ;;  %v1043_v61 = vsel %vm618_vm11, %v1042_v5, %v2682_v59 }
 0x1e8   :  { %v2709_v31 = vpop.permute.xlu0 %1335  ;;  %v537_v7 = vpop.permute.xlu1 %536 }
 0x1e9   :  { %v722_v15 = vrot.slane %v537_v7, %v2735_v0 }
 0x1eb   :  { %v723_v9 = vsel %vm639_vm14, %v722_v15, %v718_v19 }
 0x1ec   :  { %v492_v55 = vpop.permute.xlu0 %491  ;;  %v2719_v36 = vpop.permute.xlu1 %976 }
 0x1ed   :  { %v645_v18 = vrot.slane %v492_v55, %v2738_v8  ;;  %v1126_v47 = vrot.slane %v2719_v36, %v2666_v17  ;;  %v1122_v36 = vsel %vm618_vm11, %v1121_v6, %v2701_v24 }
 0x1ef   :  { %v647_v14 = vsel %vm646_vm15, %v645_v18, %v640_v1  ;;  %v1127_v37 = vsel %vm625_vm12, %v1126_v47, %v1122_v36  ;;  %v1524_v1 = vrot.slane %v2713_v33, %v2545_v10  ;;  %v1582_v36 = vsub.s32 4, %v1984_v2 }
 0x1f0   :  { %v2715_v49 = vpop.permute.xlu0 %931  ;;  %v2721_v25 = vpop.permute.xlu1 %1383 }
 0x1f1   :  { %v1052_v55 = vrot.slane %v2715_v49, %v2730_v58  ;;  %v1048_v49 = vsel %vm625_vm12, %v1047_v26, %v1043_v61 }
 0x1f4   :  { %v2717_v40 = vpop.permute.xlu0 %1338  ;;  %v540_v12 = vpop.permute.xlu1 %539 }
 0x1f5   :  { %v727_v16 = vrot.slane %v540_v12, %v2738_v8 }
 0x1f7   :  { %v728_v51 = vsel %vm646_vm15, %v727_v16, %v723_v9 }
 0x1f8   :  { %v495_v32 = vpop.permute.xlu0 %494  ;;  %v980_v45 = vpop.permute.xlu1 %979 }
 0x1f9   :  { %v652_v50 = vrot.slane %v495_v32, %v2741_v56  ;;  %v1131_v7 = vrot.slane %v980_v45, %v2730_v58  ;;  %v1053_v45 = vsel %vm632_vm13, %v1052_v55, %v1048_v49 }
 0x1fb   :  { %v654_v62 = vsel %vm653_vm0, %v652_v50, %v647_v14  ;;  %v1132_v24 = vsel %vm632_vm13, %v1131_v7, %v1127_v37  ;;  %v1450_v14 = vrot.slane %v2709_v31, %v2587_v41  ;;  %v1525_v31 = vsel %vm604_vm8, %v1524_v1, %v2705_v27 }
 0x1fc   :  { %v2723_v38 = vpop.permute.xlu0 %934  ;;  %v2745_v44 = vpop.permute.xlu1 %1386 }
 0x1fd   :  { %v1057_v13 = vrot.slane %v2723_v38, %v2735_v0  ;;  %v2794_v38 = vld [vmem:[%s2874_s1] sm:$0xff] }
 0x1fe   :  { %v415_v59 = vrot.slane %v2794_v38, %v414_v53 }
 0x1ff   :  { %v1058_v54 = vsel %vm639_vm14, %v1057_v13, %v1053_v45 }
 0x200   :  { %v2732_v28 = vpop.permute.xlu0 %1341  ;;  %v543_v3 = vpop.permute.xlu1 %542 }
 0x201   :  { %v732_v34 = vrot.slane %v543_v3, %v2741_v56  ;;  %v1445_v3 = vrot.slane %v2697_v4, %v2545_v10  ;;  %v1460_v4 = vrot.slane %v2732_v28, %v2666_v17 }
 0x203   :  { %v733_v63 = vsel %vm653_vm0, %v732_v34, %v728_v51  ;;  %v1529_v51 = vrot.slane %v2721_v25, %v2587_v41  ;;  %v1446_v33 = vsel %vm604_vm8, %v1445_v3, %v2688_v43 }
 0x204   :  { %v938_v42 = vpop.permute.xlu0 %937  ;;  %v735_v30 = vsel %vm734_vm1, %v733_v63, %v654_v62  ;;  %v983_v23 = vpop.permute.xlu1 %982  ;;  %v1455_v63 = vrot.slane %v2717_v40, %v2629_v20 }
 0x205   :  { %v1136_v39 = vrot.slane %v983_v23, %v2735_v0  ;;  %v1062_v12 = vrot.slane %v938_v42, %v2738_v8  ;;  %v737_v19 = vadd.f32 %v735_v30, %v415_v59  ;;  %v1534_v30 = vrot.slane %v2745_v44, %v2629_v20 }
 0x206   :  { %v1451_v20 = vsel %vm611_vm10, %v1450_v14, %v1446_v33  ;;  %v1530_v28 = vsel %vm611_vm10, %v1529_v51, %v1525_v31  ;;  %v1673_v59 = vsub.s32 5, %v1984_v2 }
 0x207   :  { %v1137_v46 = vsel %vm639_vm14, %v1136_v39, %v1132_v24  ;;  %v1063_v18 = vsel %vm646_vm15, %v1062_v12, %v1058_v54  ;;  %v1456_v43 = vsel %vm618_vm11, %v1455_v63, %v1451_v20  ;;  %v1669_v39 = vld [vmem:[%s2874_s1 + $0xf8] sm:$0xff]  ;;  %v1583_v12 = vrot.slane %v2794_v38, %v1582_v36 }
 0x208   :  { %v2763_v35 = vpop.permute.xlu0 %1344  ;;  %v2765_v21 = vpop.permute.xlu1 %1389  ;;  %v1674_v45 = vrot.slane %v2794_v38, %v1673_v59 }
 0x209   :  { %v1539_v10 = vrot.slane %v2765_v21, %v2666_v17  ;;  %v1465_v41 = vrot.slane %v2763_v35, %v2730_v58  ;;  %v1535_v21 = vsel %vm618_vm11, %v1534_v30, %v1530_v28 }
 0x20c   :  { %v941_v11 = vpop.permute.xlu0 %940 }
 0x20d   :  { %v1067_v57 = vrot.slane %v941_v11, %v2741_v56  ;;  %v1540_v11 = vsel %vm625_vm12, %v1539_v10, %v1535_v21 }
 0x20f   :  { %v1068_v50 = vsel %vm653_vm0, %v1067_v57, %v1063_v18 }
 0x210   :  { %v986_v48 = vpop.permute.xlu1 %985  ;;  %v1348_v52 = vpop.permute.xlu0 %1347 }
 0x211   :  { %v1141_v29 = vrot.slane %v986_v48, %v2738_v8  ;;  %v1470_v44 = vrot.slane %v1348_v52, %v2735_v0 }
 0x213   :  { %v1142_v16 = vsel %vm646_vm15, %v1141_v29, %v1137_v46 }
 0x214   :  { %v1393_v32 = vpop.permute.xlu1 %1392  ;;  %v1351_v42 = vpop.permute.xlu0 %1350 }
 0x215   :  { %v1544_v40 = vrot.slane %v1393_v32, %v2730_v58  ;;  %v1475_v27 = vrot.slane %v1351_v42, %v2738_v8  ;;  %v1461_v58 = vsel %vm625_vm12, %v1460_v4, %v1456_v43 }
 0x216   :  { %v1466_v5 = vsel %vm632_vm13, %v1465_v41, %v1461_v58 }
 0x217   :  { %v1545_v6 = vsel %vm632_vm13, %v1544_v40, %v1540_v11 }
 0x218   :  { %v989_v60 = vpop.permute.xlu1 %988  ;;  %v1354_v25 = vpop.permute.xlu0 %1353 }
 0x219   :  { %v1146_v15 = vrot.slane %v989_v60, %v2741_v56  ;;  %v1480_v48 = vrot.slane %v1354_v25, %v2741_v56 }
 0x21b   :  { %v1147_v22 = vsel %vm653_vm0, %v1146_v15, %v1142_v16 }
 0x21c   :  { %v1396_v9 = vpop.permute.xlu1 %1395  ;;  %v1148_v34 = vsel %vm734_vm1, %v1147_v22, %v1068_v50 }
 0x21d   :  { %v1150_v62 = vadd.f32 %v1148_v34, %v737_v19  ;;  %v1549_v17 = vrot.slane %v1396_v9, %v2735_v0  ;;  %v1471_v0 = vsel %vm639_vm14, %v1470_v44, %v1466_v5 }
 0x21e   :  { %v1476_v55 = vsel %vm646_vm15, %v1475_v27, %v1471_v0 }
 0x21f   :  { %v1550_v47 = vsel %vm639_vm14, %v1549_v17, %v1545_v6  ;;  %v1481_v7 = vsel %vm653_vm0, %v1480_v48, %v1476_v55 }
 0x220   :  { %v1399_v23 = vpop.permute.xlu1 %1398 }
 0x221   :  { %v1554_v35 = vrot.slane %v1399_v23, %v2738_v8 }
 0x223   :  { %v1555_v8 = vsel %vm646_vm15, %v1554_v35, %v1550_v47 }
 0x224   :  { %v1402_v26 = vpop.permute.xlu1 %1401 }
 0x225   :  { %v1559_v53 = vrot.slane %v1402_v26, %v2741_v56  ;;  %v1670_v56 = vld [vmem:[%s2874_s1 + $0x100] sm:$0xff]  ;;  %s1964_s1 = smov [#allocation2]  }
 0x226   :  { %v1922_v61 = vpack.c.bf16 %v1670_v56, %v1669_v39  ;;  %s1764_s22 = sshll.u32 %s1964_s1, 4  ;;  %s1765_s22 = int_to_ptr.vmem [resolvable:$true] %s1764_s22 }
 0x227   :  { %v1560_v32 = vsel %vm653_vm0, %v1559_v53, %v1555_v8  ;;  %s1936_s23 = scalar_lea.vmem %s1765_s22, 32  ;;  %p1941_p1 = scmp.lt.s32.totalorder %s1765_s22, %s1765_s22 }
 0x228   :  { %v1561_v52 = vsel %vm734_vm1, %v1560_v32, %v1481_v7  ;;  %1923 = vmatpush3.bf16.msra.mxu1 %v1922_v61  ;;  %p1937_p0 = scmp.ne.s32.totalorder %s1765_s22, %s1936_s23  ;;  %p1942_p2 = scmp.lt.s32.totalorder %s1936_s23, %s1936_s23 }
 0x229   :  { %v1563_v13 = vadd.f32 %v1561_v52, %v1150_v62 }
 0x22a   :  { %p1943_p3 = por %p1942_p2, %p1941_p1 }
 0x22b   :  { %1839 = vmatmul.mubr.f32.vlgmr.msra.gmra.mrb[0].mxu0 %v1563_v13 }
 0x22c   :  { %p1944_p4 = pnand %p1943_p3, %p1937_p0 }
 0x2fe   :  { %v1650_v29 = vpop.f32.mrb[0].mxu0 }
 0x2ff   :  { %v1651_v49 = vadd.f32 %v1650_v29, %v1583_v12  ;;  %v1840_v37 = vpop.f32.mrb[1].mxu0 }
 0x301   :  { %v1654_v57 = vmax.f32 %v1651_v49, 0.0 }
 0x303   :  { %1874 = vmatmul.mubr.f32.vlgmr.msra.gmra.mrb[0].mxu1 %v1654_v57 }
 0x3d6   :  { %v1741_v24 = vpop.f32.mrb[0].mxu1 }
 0x3d7   :  { %v1742_v60 = vadd.f32 %v1741_v24, %v1674_v45  ;;  %v1875_v54 = vpop.f32.mrb[1].mxu1 }
 0x3d9   :  { %v1746_v46 = vsel %vm1745_vm2, %v1742_v60, -inf }
 0x3da   :  { %1747 = vmax.xlane.f32.xlu0 %v1746_v46 }
 0x467   :  { %v1748_v15 = vpop.xlane.xlu0 %1747 }
 0x468   :  { %v1749_v18 = vsub.f32 %v1742_v60, %v1748_v15 }
 0x46a   :  { %v1750_v16 = vmul.f32 1.442695, %v1749_v18 }
 0x46c   :  { %1931 = vpow2.f32 %v1750_v16 }
 0x476   :  { %v1932_v42 = vpop.eup %1931 }
 0x477   :  { %v1752_v50 = vsel %vm1745_vm2, %v1932_v42, 0.0 }
 0x478   :  { %1753 = vadd.xlane.f32.xlu1 %v1752_v50 }
 0x505   :  { %v1754_v22 = vpop.xlane.xlu1 %1753 }
 0x506   :  { %1933 = vrcp.f32 %v1754_v22 }
 0x510   :  { %v1934_v2 = vpop.eup %1933 }
 0x511   :  { %v1756_v19 = vmul.f32 %v1934_v2, %v1932_v42 }
 0x513   :  { %1757 = vst [vmem:[#allocation2] sm:$0x3] %v1756_v19 }
 0x514   :  { %1947 = shalt.err (!%p1944_p4)
}
 0x515   :  { %s1948_s26 = scalar_lea.hbm %s2875_s2, 32 }
 0x516   :  { %p1949_p5 = scmp.ne.s32.totalorder %s2875_s2, %s1948_s26  ;;  %p1952_p6 = scmp.lt.u32.totalorder %s1948_s26, %s2875_s2 }
 0x518   :  { %p1954_p7 = pnand %p1952_p6, %p1949_p5 }
 0x51a   :  { %1957 = shalt.err (!%p1954_p7)
}
 0x51b   :  { %1767 = dma.vmem_to_hbm [thread:$0]  %s1765_s22, 32, %s2875_s2, [#allocation3]  }
 0x51c   :  { %1958 = dma.done.wait [#allocation3], 32  }
 0x51d   :  { %1959 = vsyncadd [#allocation3], 4294967264 }
 0x51e   :  { %1771 = vsyncpa [#allocation3], 1 }

</bundles_post_ra>
